<compile_context>
chip_gen: v7x
topology: tpu7x:2x2x1
jax: 0.10.0
libtpu: 0.0.40
codegen_flags: <defaults>
</compile_context>

<pallas_src>
import jax
import jax.numpy as jnp
from jax.experimental import pallas as pl
from jax.experimental.pallas import tpu as pltpu


LANE = 128     # f32 lane width
SUBLANE = 8    # f32 sublanes
BT = 8         # batch rows handled per grid step (one sublane group)


def _rup(n, m):
    return ((n + m - 1) // m) * m


def _pad_to(x, shape):
    return jnp.pad(x, [(0, t - s) for s, t in zip(x.shape, shape)])


# --------------------------------------------------------------------------
# Kernel
# --------------------------------------------------------------------------
def decoder_step_kernel(
    x_emb_ref, h_ref, c_ref, hsum_ref, e1_ref, enc_ref,
    w2_ref, b2_ref, v_ref, bv_ref,
    wih_ctx_ref, wih_emb_ref, whh_ref, bg_ref,
    wf1_ref, bf1_ref, wf2_ref, bf2_ref,
    logits_ref, hnew_ref, cnew_ref, attn_ref,
):
    Bt, S, Hp = e1_ref.shape

    x_emb = x_emb_ref[...]          # [Bt, Ep]
    h = h_ref[...]                  # [Bt, Hp]
    c = c_ref[...]                  # [Bt, Hp]
    h_sum = hsum_ref[...]           # [Bt, Hp] (sum over layer axis, done in glue)
    e1 = e1_ref[...]                # [Bt, S, Hp]  precomputed enc @ W1 + b1
    enc = enc_ref[...]              # [Bt, S, Dp]

    # ---------------- attention ----------------
    e2 = jnp.dot(h_sum, w2_ref[...], preferred_element_type=jnp.float32) + b2_ref[...]
    score = jnp.tanh(e1 + e2[:, None, :])                          # [Bt, S, Hp]

    # V(score): width-1 MXU matmul replaced by multiply + lane reduce.
    v_row = v_ref[...].reshape(1, 1, Hp)
    att_logit = jnp.sum(score * v_row, axis=-1) + bv_ref[0, 0]     # [Bt, S]
    att_logit = att_logit - jnp.max(att_logit, axis=-1, keepdims=True)
    exps = jnp.exp(att_logit)
    denom = jnp.sum(exps, axis=-1, keepdims=True)
    attn = exps * pl.reciprocal(denom, approx=True)                # [Bt, S]
    attn_ref[...] = attn

    context = jnp.sum(attn[:, :, None] * enc, axis=1)              # [Bt, Dp]

    # ---------------- LSTM cell (1 layer, 1 step), no concat ----------------
    gates = (jnp.dot(context, wih_ctx_ref[...], preferred_element_type=jnp.float32)
             + jnp.dot(x_emb, wih_emb_ref[...], preferred_element_type=jnp.float32)
             + jnp.dot(h, whh_ref[...], preferred_element_type=jnp.float32)
             + bg_ref[...])                                        # [Bt, 4*Hp]
    # Gate weights were re-laid-out so gate k occupies its own 128-lane-aligned
    # block -> these slices are pure vreg selects (no cross-lane traffic).
    i_g = jax.nn.sigmoid(gates[:, 0 * Hp:1 * Hp])
    f_g = jax.nn.sigmoid(gates[:, 1 * Hp:2 * Hp])
    g_g = jnp.tanh(gates[:, 2 * Hp:3 * Hp])
    o_g = jax.nn.sigmoid(gates[:, 3 * Hp:4 * Hp])
    c_new = f_g * c + i_g * g_g
    h_new = o_g * jnp.tanh(c_new)
    hnew_ref[...] = h_new
    cnew_ref[...] = c_new

    # ---------------- FC head: Linear -> LeakyReLU(0.01) -> Linear ----------
    z = jnp.dot(h_new, wf1_ref[...], preferred_element_type=jnp.float32) + bf1_ref[...]
    z = jnp.where(z >= 0, z, 0.01 * z)
    logits_ref[...] = (jnp.dot(z, wf2_ref[...], preferred_element_type=jnp.float32)
                       + bf2_ref[...])


# --------------------------------------------------------------------------
# Parameters (stored [in_features, out_features]; bg = b_ih + b_hh if ported
# from PyTorch) and their padded / re-laid-out kernel form.
# --------------------------------------------------------------------------
def make_params(key, output_dim, embed_dim, hidden_dim, enc_dim):
    ks = jax.random.split(key, 16)
    s = 0.1
    return {
        "embedding": s * jax.random.normal(ks[0], (output_dim, embed_dim), jnp.float32),
        # attention
        "w1": s * jax.random.normal(ks[1], (enc_dim, hidden_dim), jnp.float32),
        "b1": s * jax.random.normal(ks[2], (1, hidden_dim), jnp.float32),
        "w2": s * jax.random.normal(ks[3], (hidden_dim, hidden_dim), jnp.float32),
        "b2": s * jax.random.normal(ks[4], (1, hidden_dim), jnp.float32),
        "v":  s * jax.random.normal(ks[5], (hidden_dim, 1), jnp.float32),
        "bv": s * jax.random.normal(ks[6], (1, 1), jnp.float32),
        # LSTM (gate order i, f, g, o; input = [context, x_emb])
        "wih": s * jax.random.normal(ks[7], (enc_dim + embed_dim, 4 * hidden_dim), jnp.float32),
        "whh": s * jax.random.normal(ks[8], (hidden_dim, 4 * hidden_dim), jnp.float32),
        "bg":  s * jax.random.normal(ks[9], (1, 4 * hidden_dim), jnp.float32),
        # FC head
        "wf1": s * jax.random.normal(ks[10], (hidden_dim, embed_dim), jnp.float32),
        "bf1": s * jax.random.normal(ks[11], (1, embed_dim), jnp.float32),
        "wf2": s * jax.random.normal(ks[12], (embed_dim, output_dim), jnp.float32),
        "bf2": s * jax.random.normal(ks[13], (1, output_dim), jnp.float32),
    }


def prepare_kernel_params(params):
    """Pad + re-layout decoder weights once (step/sequence invariant)."""
    E = params["embedding"].shape[1]
    D, H = params["w1"].shape
    O = params["wf2"].shape[1]
    Ep, Dp, Hp, Op = _rup(E, LANE), _rup(D, LANE), _rup(H, LANE), _rup(O, LANE)

    def pad_gate_cols(w):
        # [in, 4H] -> [in, 4*Hp], gate k placed at columns [k*Hp, k*Hp + H)
        out = jnp.zeros((w.shape[0], 4 * Hp), w.dtype)
        for k in range(4):
            out = out.at[:, k * Hp:k * Hp + H].set(w[:, k * H:(k + 1) * H])
        return out

    wih = params["wih"]                       # rows: [context (D) ; x_emb (E)]
    return {
        "w2": _pad_to(params["w2"], (Hp, Hp)),
        "b2": _pad_to(params["b2"], (1, Hp)),
        "v_row": _pad_to(params["v"].T, (1, Hp)),
        "bv": params["bv"],                                   # (1,1) scalar -> SMEM
        "wih_ctx": _pad_to(pad_gate_cols(wih[:D]), (Dp, 4 * Hp)),
        "wih_emb": _pad_to(pad_gate_cols(wih[D:]), (Ep, 4 * Hp)),
        "whh": _pad_to(pad_gate_cols(params["whh"]), (Hp, 4 * Hp)),
        "bg": pad_gate_cols(params["bg"]),
        "wf1": _pad_to(params["wf1"], (Hp, Ep)),
        "bf1": _pad_to(params["bf1"], (1, Ep)),
        "wf2": _pad_to(params["wf2"], (Ep, Op)),
        "bf2": _pad_to(params["bf2"], (1, Op)),
        "dims": (E, D, H, O, Ep, Dp, Hp, Op),
    }


# --------------------------------------------------------------------------
# Wrapper
# --------------------------------------------------------------------------
def decoder_forward(params, x_ids, hidden, enc_output, kparams=None):
    """x_ids: int32 [B, 1]; hidden: (h, c) each [L, B, H]; enc_output: [B, S, Denc]."""
    if kparams is None:
        kparams = prepare_kernel_params(params)   # hoist out of any decode loop
    E, D, H, O, Ep, Dp, Hp, Op = kparams["dims"]

    x_emb = params["embedding"][x_ids[:, 0]]      # [B, E]  embedding gather = glue
    h_all, c_all = hidden
    h_sum = jnp.sum(h_all, axis=0)                # attention query (sum over layers)
    h0, c0 = h_all[0], c_all[0]                   # layers = 1
    B, S, _ = enc_output.shape

    # Step-invariant encoder projection, computed once per sequence (hoisted).
    e1 = jnp.einsum("bsd,dh->bsh", enc_output, params["w1"]) + params["b1"]

    Bp = _rup(B, SUBLANE)
    x_emb_p = _pad_to(x_emb, (Bp, Ep))
    h0_p = _pad_to(h0, (Bp, Hp))
    c0_p = _pad_to(c0, (Bp, Hp))
    hsum_p = _pad_to(h_sum, (Bp, Hp))
    e1_p = _pad_to(e1, (Bp, S, Hp))
    enc_p = _pad_to(enc_output, (Bp, S, Dp))

    nb = Bp // BT
    wspec = lambda shape: pl.BlockSpec(shape, lambda b, _s=shape: (0,) * len(_s))

    logits_p, hnew_p, cnew_p, attn_p = pl.pallas_call(
        decoder_step_kernel,
        grid=(nb,),
        out_shape=(
            jax.ShapeDtypeStruct((Bp, Op), jnp.float32),
            jax.ShapeDtypeStruct((Bp, Hp), jnp.float32),
            jax.ShapeDtypeStruct((Bp, Hp), jnp.float32),
            jax.ShapeDtypeStruct((Bp, S), jnp.float32),
        ),
        in_specs=[
            pl.BlockSpec((BT, Ep), lambda b: (b, 0)),          # x_emb
            pl.BlockSpec((BT, Hp), lambda b: (b, 0)),          # h
            pl.BlockSpec((BT, Hp), lambda b: (b, 0)),          # c
            pl.BlockSpec((BT, Hp), lambda b: (b, 0)),          # h_sum
            pl.BlockSpec((BT, S, Hp), lambda b: (b, 0, 0)),    # e1
            pl.BlockSpec((BT, S, Dp), lambda b: (b, 0, 0)),    # enc
            wspec((Hp, Hp)),                                   # w2
            wspec((1, Hp)),                                    # b2
            wspec((1, Hp)),                                    # v_row
            pl.BlockSpec((1, 1), lambda b: (0, 0),
                         memory_space=pltpu.MemorySpace.SMEM),  # bv (scalar)
            wspec((Dp, 4 * Hp)),                               # wih_ctx
            wspec((Ep, 4 * Hp)),                               # wih_emb
            wspec((Hp, 4 * Hp)),                               # whh
            wspec((1, 4 * Hp)),                                # bg
            wspec((Hp, Ep)),                                   # wf1
            wspec((1, Ep)),                                    # bf1
            wspec((Ep, Op)),                                   # wf2
            wspec((1, Op)),                                    # bf2
        ],
        out_specs=(
            pl.BlockSpec((BT, Op), lambda b: (b, 0)),
            pl.BlockSpec((BT, Hp), lambda b: (b, 0)),
            pl.BlockSpec((BT, Hp), lambda b: (b, 0)),
            pl.BlockSpec((BT, S), lambda b: (b, 0)),
        ),
        compiler_params=pltpu.CompilerParams(
            dimension_semantics=("parallel",)),
    )(x_emb_p, h0_p, c0_p, hsum_p, e1_p, enc_p,
      kparams["w2"], kparams["b2"], kparams["v_row"], kparams["bv"],
      kparams["wih_ctx"], kparams["wih_emb"], kparams["whh"], kparams["bg"],
      kparams["wf1"], kparams["bf1"], kparams["wf2"], kparams["bf2"])

    logits = logits_p[:B, :O]
    h_new = hnew_p[:B, :H]
    c_new = cnew_p[:B, :H]
    attn = attn_p[:B]

    hidden_new = (h_new[None], c_new[None])        # ([L,B,H], [L,B,H]), L = 1
    attention_weights = attn[:, :, None]           # [B, S, 1]
    return logits, hidden_new, attention_weights   # logits: [B*T, output_dim], T = 1


# --------------------------------------------------------------------------
# Pure-JAX reference (identical semantics) for the correctness check.
# --------------------------------------------------------------------------
def decoder_forward_ref(params, x_ids, hidden, enc_output):
    x_emb = params["embedding"][x_ids[:, 0]]
    h_all, c_all = hidden
    h_sum = jnp.sum(h_all, axis=0)
    h0, c0 = h_all[0], c_all[0]
    H = h0.shape[-1]

    e1 = jnp.einsum("bsd,dh->bsh", enc_output, params["w1"]) + params["b1"]
    e2 = (h_sum @ params["w2"] + params["b2"])[:, None, :]
    score = jnp.tanh(e1 + e2)
    att_logit = jnp.einsum("bsh,ho->bso", score, params["v"]) + params["bv"]
    attn = jax.nn.softmax(att_logit, axis=1)                       # [B, S, 1]
    context = jnp.sum(attn * enc_output, axis=1)                   # [B, D]

    rnn_in = jnp.concatenate([context, x_emb], axis=-1)
    gates = rnn_in @ params["wih"] + h0 @ params["whh"] + params["bg"]
    i_g = jax.nn.sigmoid(gates[:, 0:H])
    f_g = jax.nn.sigmoid(gates[:, H:2 * H])
    g_g = jnp.tanh(gates[:, 2 * H:3 * H])
    o_g = jax.nn.sigmoid(gates[:, 3 * H:4 * H])
    c_new = f_g * c0 + i_g * g_g
    h_new = o_g * jnp.tanh(c_new)

    z = h_new @ params["wf1"] + params["bf1"]
    z = jnp.where(z >= 0, z, 0.01 * z)
    logits = z @ params["wf2"] + params["bf2"]
    return logits, (h_new[None], c_new[None]), attn


if __name__ == "__main__":
    B, S = 2, 8
    output_dim, embed_dim, hidden_dim = 16, 32, 32
    enc_dim = hidden_dim

    key = jax.random.PRNGKey(0)
    kp, kx, kh, kc, ke = jax.random.split(key, 5)

    params = make_params(kp, output_dim, embed_dim, hidden_dim, enc_dim)
    x_ids = jax.random.randint(kx, (B, 1), 0, output_dim, dtype=jnp.int32)
    h0 = 0.1 * jax.random.normal(kh, (1, B, hidden_dim), jnp.float32)
    c0 = 0.1 * jax.random.normal(kc, (1, B, hidden_dim), jnp.float32)
    enc_output = jax.random.normal(ke, (B, S, enc_dim), jnp.float32)

    kparams = prepare_kernel_params(params)   # once per model, reused every step

    logits, (h_new, c_new), attn_w = decoder_forward(
        params, x_ids, (h0, c0), enc_output, kparams=kparams)
    jax.block_until_ready((logits, h_new, c_new, attn_w))

    r_logits, (r_h, r_c), r_attn = decoder_forward_ref(params, x_ids, (h0, c0), enc_output)
    assert jnp.allclose(logits, r_logits, rtol=2e-3, atol=2e-3)
    assert jnp.allclose(h_new, r_h, rtol=2e-3, atol=2e-3)
    assert jnp.allclose(c_new, r_c, rtol=2e-3, atol=2e-3)
    assert jnp.allclose(attn_w, r_attn, rtol=2e-3, atol=2e-3)

    print("KERNEL_OK")
</pallas_src>

<mosaic_0001>
module attributes {stable_mosaic.version = 11 : i64} {
  func.func @decoder_step_kernel(%arg0: i32, %arg1: memref<8x128xf32, #tpu.memory_space<vmem>>, %arg2: memref<8x128xf32, #tpu.memory_space<vmem>>, %arg3: memref<8x128xf32, #tpu.memory_space<vmem>>, %arg4: memref<8x128xf32, #tpu.memory_space<vmem>>, %arg5: memref<8x8x128xf32, #tpu.memory_space<vmem>>, %arg6: memref<8x8x128xf32, #tpu.memory_space<vmem>>, %arg7: memref<128x128xf32, #tpu.memory_space<vmem>>, %arg8: memref<1x128xf32, #tpu.memory_space<vmem>>, %arg9: memref<1x128xf32, #tpu.memory_space<vmem>>, %arg10: memref<1x1xf32, #tpu.memory_space<smem>>, %arg11: memref<128x512xf32, #tpu.memory_space<vmem>>, %arg12: memref<128x512xf32, #tpu.memory_space<vmem>>, %arg13: memref<128x512xf32, #tpu.memory_space<vmem>>, %arg14: memref<1x512xf32, #tpu.memory_space<vmem>>, %arg15: memref<128x128xf32, #tpu.memory_space<vmem>>, %arg16: memref<1x128xf32, #tpu.memory_space<vmem>>, %arg17: memref<128x128xf32, #tpu.memory_space<vmem>>, %arg18: memref<1x128xf32, #tpu.memory_space<vmem>>, %arg19: memref<8x128xf32, #tpu.memory_space<vmem>>, %arg20: memref<8x128xf32, #tpu.memory_space<vmem>>, %arg21: memref<8x128xf32, #tpu.memory_space<vmem>>, %arg22: memref<8x8xf32, #tpu.memory_space<vmem>>) attributes {dimension_semantics = [#tpu.dimension_semantics<parallel>], iteration_bounds = array<i64: 1>, scalar_prefetch = 0 : i64, scratch_operands = 0 : i64, tpu.core_type = #tpu.core_type<tc>, window_params = [{transform_indices = @transform_0, window_bounds = array<i64: 8, 128>}, {transform_indices = @transform_1, window_bounds = array<i64: 8, 128>}, {transform_indices = @transform_2, window_bounds = array<i64: 8, 128>}, {transform_indices = @transform_3, window_bounds = array<i64: 8, 128>}, {transform_indices = @transform_4, window_bounds = array<i64: 8, 8, 128>}, {transform_indices = @transform_5, window_bounds = array<i64: 8, 8, 128>}, {pipeline_mode = #tpu.pipeline_mode<synchronous>, transform_indices = @transform_6, window_bounds = array<i64: 128, 128>}, {pipeline_mode = #tpu.pipeline_mode<synchronous>, transform_indices = @transform_7, window_bounds = array<i64: 1, 128>}, {pipeline_mode = #tpu.pipeline_mode<synchronous>, transform_indices = @transform_8, window_bounds = array<i64: 1, 128>}, {transform_indices = @transform_9, window_bounds = array<i64: 1, 1>}, {pipeline_mode = #tpu.pipeline_mode<synchronous>, transform_indices = @transform_10, window_bounds = array<i64: 128, 512>}, {pipeline_mode = #tpu.pipeline_mode<synchronous>, transform_indices = @transform_11, window_bounds = array<i64: 128, 512>}, {pipeline_mode = #tpu.pipeline_mode<synchronous>, transform_indices = @transform_12, window_bounds = array<i64: 128, 512>}, {pipeline_mode = #tpu.pipeline_mode<synchronous>, transform_indices = @transform_13, window_bounds = array<i64: 1, 512>}, {pipeline_mode = #tpu.pipeline_mode<synchronous>, transform_indices = @transform_14, window_bounds = array<i64: 128, 128>}, {pipeline_mode = #tpu.pipeline_mode<synchronous>, transform_indices = @transform_15, window_bounds = array<i64: 1, 128>}, {pipeline_mode = #tpu.pipeline_mode<synchronous>, transform_indices = @transform_16, window_bounds = array<i64: 128, 128>}, {pipeline_mode = #tpu.pipeline_mode<synchronous>, transform_indices = @transform_17, window_bounds = array<i64: 1, 128>}, {transform_indices = @transform_18, window_bounds = array<i64: 8, 128>}, {transform_indices = @transform_19, window_bounds = array<i64: 8, 128>}, {transform_indices = @transform_20, window_bounds = array<i64: 8, 128>}, {transform_indices = @transform_21, window_bounds = array<i64: 8, 8>}]} {
    %c0 = arith.constant 0 : index
    %c0_0 = arith.constant 0 : index
    %0 = vector.load %arg1[%c0, %c0_0] : memref<8x128xf32, #tpu.memory_space<vmem>>, vector<8x128xf32>
    %c0_1 = arith.constant 0 : index
    %c0_2 = arith.constant 0 : index
    %1 = vector.load %arg2[%c0_1, %c0_2] : memref<8x128xf32, #tpu.memory_space<vmem>>, vector<8x128xf32>
    %c0_3 = arith.constant 0 : index
    %c0_4 = arith.constant 0 : index
    %2 = vector.load %arg3[%c0_3, %c0_4] : memref<8x128xf32, #tpu.memory_space<vmem>>, vector<8x128xf32>
    %c0_5 = arith.constant 0 : index
    %c0_6 = arith.constant 0 : index
    %3 = vector.load %arg4[%c0_5, %c0_6] : memref<8x128xf32, #tpu.memory_space<vmem>>, vector<8x128xf32>
    %c0_7 = arith.constant 0 : index
    %c0_8 = arith.constant 0 : index
    %c0_9 = arith.constant 0 : index
    %4 = vector.load %arg5[%c0_7, %c0_8, %c0_9] : memref<8x8x128xf32, #tpu.memory_space<vmem>>, vector<8x8x128xf32>
    %c0_10 = arith.constant 0 : index
    %c0_11 = arith.constant 0 : index
    %c0_12 = arith.constant 0 : index
    %5 = vector.load %arg6[%c0_10, %c0_11, %c0_12] : memref<8x8x128xf32, #tpu.memory_space<vmem>>, vector<8x8x128xf32>
    %c0_13 = arith.constant 0 : index
    %c0_14 = arith.constant 0 : index
    %6 = vector.load %arg7[%c0_13, %c0_14] : memref<128x128xf32, #tpu.memory_space<vmem>>, vector<128x128xf32>
    %cst = arith.constant dense<0.000000e+00> : vector<8x128xf32>
    %7 = tpu.matmul %3, %6, %cst {dimension_numbers = #tpu.dot_dimension_numbers<[1], [0], [0], [1], [0, 0, 1, 1], [], []>} : vector<8x128xf32>, vector<128x128xf32>, vector<8x128xf32> -> vector<8x128xf32>
    %c0_15 = arith.constant 0 : index
    %c0_16 = arith.constant 0 : index
    %8 = vector.load %arg8[%c0_15, %c0_16] : memref<1x128xf32, #tpu.memory_space<vmem>>, vector<1x128xf32>
    %9 = vector.broadcast %8 : vector<1x128xf32> to vector<8x128xf32>
    %10 = arith.addf %7, %9 : vector<8x128xf32>
    %11 = vector.shape_cast %10 : vector<8x128xf32> to vector<8x1x128xf32>
    %12 = vector.broadcast %11 : vector<8x1x128xf32> to vector<8x8x128xf32>
    %13 = arith.addf %4, %12 : vector<8x8x128xf32>
    %14 = math.tanh %13 : vector<8x8x128xf32>
    %c0_17 = arith.constant 0 : index
    %c0_18 = arith.constant 0 : index
    %15 = vector.load %arg9[%c0_17, %c0_18] : memref<1x128xf32, #tpu.memory_space<vmem>>, vector<1x128xf32>
    %16 = vector.shape_cast %15 : vector<1x128xf32> to vector<1x1x128xf32>
    %17 = vector.broadcast %16 : vector<1x1x128xf32> to vector<8x8x128xf32>
    %18 = arith.mulf %14, %17 : vector<8x8x128xf32>
    %cst_19 = arith.constant dense<0.000000e+00> : vector<8x8xf32>
    %19 = vector.multi_reduction <add>, %18, %cst_19 [2] : vector<8x8x128xf32> to vector<8x8xf32>
    %c0_20 = arith.constant 0 : index
    %c0_21 = arith.constant 0 : index
    %20 = memref.load %arg10[%c0_20, %c0_21] : memref<1x1xf32, #tpu.memory_space<smem>>
    %21 = vector.broadcast %20 : f32 to vector<8x8xf32>
    %22 = arith.addf %19, %21 : vector<8x8xf32>
    %cst_22 = arith.constant dense<0xFF800000> : vector<8xf32>
    %23 = vector.multi_reduction <maximumf>, %22, %cst_22 [1] : vector<8x8xf32> to vector<8xf32>
    %24 = vector.shape_cast %23 : vector<8xf32> to vector<8x1xf32>
    %25 = vector.broadcast %24 : vector<8x1xf32> to vector<8x8xf32>
    %26 = arith.subf %22, %25 : vector<8x8xf32>
    %27 = math.exp %26 : vector<8x8xf32>
    %cst_23 = arith.constant dense<0.000000e+00> : vector<8xf32>
    %28 = vector.multi_reduction <add>, %27, %cst_23 [1] : vector<8x8xf32> to vector<8xf32>
    %29 = vector.shape_cast %28 : vector<8xf32> to vector<8x1xf32>
    %30 = tpu.reciprocal %29 {approx = true} : vector<8x1xf32> -> vector<8x1xf32>
    %31 = vector.broadcast %30 : vector<8x1xf32> to vector<8x8xf32>
    %32 = arith.mulf %27, %31 : vector<8x8xf32>
    %c0_24 = arith.constant 0 : index
    %c0_25 = arith.constant 0 : index
    %33 = vector.load %arg22[%c0_24, %c0_25] : memref<8x8xf32, #tpu.memory_space<vmem>>, vector<8x8xf32>
    tpu.vector_store %arg22[%c0_24, %c0_25], %32 {strides = array<i32>} : memref<8x8xf32, #tpu.memory_space<vmem>>, vector<8x8xf32>,
    %34 = vector.shape_cast %32 : vector<8x8xf32> to vector<8x8x1xf32>
    %35 = vector.broadcast %34 : vector<8x8x1xf32> to vector<8x8x128xf32>
    %36 = arith.mulf %35, %5 : vector<8x8x128xf32>
    %cst_26 = arith.constant dense<0.000000e+00> : vector<8x128xf32>
    %37 = vector.multi_reduction <add>, %36, %cst_26 [1] : vector<8x8x128xf32> to vector<8x128xf32>
    %c0_27 = arith.constant 0 : index
    %c0_28 = arith.constant 0 : index
    %38 = vector.load %arg11[%c0_27, %c0_28] : memref<128x512xf32, #tpu.memory_space<vmem>>, vector<128x512xf32>
    %cst_29 = arith.constant dense<0.000000e+00> : vector<8x512xf32>
    %39 = tpu.matmul %37, %38, %cst_29 {dimension_numbers = #tpu.dot_dimension_numbers<[1], [0], [0], [1], [0, 0, 1, 1], [], []>} : vector<8x128xf32>, vector<128x512xf32>, vector<8x512xf32> -> vector<8x512xf32>
    %c0_30 = arith.constant 0 : index
    %c0_31 = arith.constant 0 : index
    %40 = vector.load %arg12[%c0_30, %c0_31] : memref<128x512xf32, #tpu.memory_space<vmem>>, vector<128x512xf32>
    %cst_32 = arith.constant dense<0.000000e+00> : vector<8x512xf32>
    %41 = tpu.matmul %0, %40, %cst_32 {dimension_numbers = #tpu.dot_dimension_numbers<[1], [0], [0], [1], [0, 0, 1, 1], [], []>} : vector<8x128xf32>, vector<128x512xf32>, vector<8x512xf32> -> vector<8x512xf32>
    %42 = arith.addf %39, %41 : vector<8x512xf32>
    %c0_33 = arith.constant 0 : index
    %c0_34 = arith.constant 0 : index
    %43 = vector.load %arg13[%c0_33, %c0_34] : memref<128x512xf32, #tpu.memory_space<vmem>>, vector<128x512xf32>
    %cst_35 = arith.constant dense<0.000000e+00> : vector<8x512xf32>
    %44 = tpu.matmul %1, %43, %cst_35 {dimension_numbers = #tpu.dot_dimension_numbers<[1], [0], [0], [1], [0, 0, 1, 1], [], []>} : vector<8x128xf32>, vector<128x512xf32>, vector<8x512xf32> -> vector<8x512xf32>
    %45 = arith.addf %42, %44 : vector<8x512xf32>
    %c0_36 = arith.constant 0 : index
    %c0_37 = arith.constant 0 : index
    %46 = vector.load %arg14[%c0_36, %c0_37] : memref<1x512xf32, #tpu.memory_space<vmem>>, vector<1x512xf32>
    %47 = vector.broadcast %46 : vector<1x512xf32> to vector<8x512xf32>
    %48 = arith.addf %45, %47 : vector<8x512xf32>
    %49 = vector.extract_strided_slice %48 {offsets = [0, 0], sizes = [8, 128], strides = [1, 1]} : vector<8x512xf32> to vector<8x128xf32>
    %50 = arith.negf %49 : vector<8x128xf32>
    %51 = math.exp %50 : vector<8x128xf32>
    %cst_38 = arith.constant 1.000000e+00 : f32
    %52 = vector.broadcast %cst_38 : f32 to vector<8x128xf32>
    %53 = arith.addf %52, %51 : vector<8x128xf32>
    %54 = arith.divf %52, %53 : vector<8x128xf32>
    %55 = vector.extract_strided_slice %48 {offsets = [0, 128], sizes = [8, 128], strides = [1, 1]} : vector<8x512xf32> to vector<8x128xf32>
    %56 = arith.negf %55 : vector<8x128xf32>
    %57 = math.exp %56 : vector<8x128xf32>
    %cst_39 = arith.constant 1.000000e+00 : f32
    %58 = vector.broadcast %cst_39 : f32 to vector<8x128xf32>
    %59 = arith.addf %58, %57 : vector<8x128xf32>
    %60 = arith.divf %58, %59 : vector<8x128xf32>
    %61 = vector.extract_strided_slice %48 {offsets = [0, 256], sizes = [8, 128], strides = [1, 1]} : vector<8x512xf32> to vector<8x128xf32>
    %62 = math.tanh %61 : vector<8x128xf32>
    %63 = vector.extract_strided_slice %48 {offsets = [0, 384], sizes = [8, 128], strides = [1, 1]} : vector<8x512xf32> to vector<8x128xf32>
    %64 = arith.negf %63 : vector<8x128xf32>
    %65 = math.exp %64 : vector<8x128xf32>
    %cst_40 = arith.constant 1.000000e+00 : f32
    %66 = vector.broadcast %cst_40 : f32 to vector<8x128xf32>
    %67 = arith.addf %66, %65 : vector<8x128xf32>
    %68 = arith.divf %66, %67 : vector<8x128xf32>
    %69 = arith.mulf %60, %2 : vector<8x128xf32>
    %70 = arith.mulf %54, %62 : vector<8x128xf32>
    %71 = arith.addf %69, %70 : vector<8x128xf32>
    %72 = math.tanh %71 : vector<8x128xf32>
    %73 = arith.mulf %68, %72 : vector<8x128xf32>
    %c0_41 = arith.constant 0 : index
    %c0_42 = arith.constant 0 : index
    %74 = vector.load %arg20[%c0_41, %c0_42] : memref<8x128xf32, #tpu.memory_space<vmem>>, vector<8x128xf32>
    tpu.vector_store %arg20[%c0_41, %c0_42], %73 {strides = array<i32>} : memref<8x128xf32, #tpu.memory_space<vmem>>, vector<8x128xf32>,
    %c0_43 = arith.constant 0 : index
    %c0_44 = arith.constant 0 : index
    %75 = vector.load %arg21[%c0_43, %c0_44] : memref<8x128xf32, #tpu.memory_space<vmem>>, vector<8x128xf32>
    tpu.vector_store %arg21[%c0_43, %c0_44], %71 {strides = array<i32>} : memref<8x128xf32, #tpu.memory_space<vmem>>, vector<8x128xf32>,
    %c0_45 = arith.constant 0 : index
    %c0_46 = arith.constant 0 : index
    %76 = vector.load %arg15[%c0_45, %c0_46] : memref<128x128xf32, #tpu.memory_space<vmem>>, vector<128x128xf32>
    %cst_47 = arith.constant dense<0.000000e+00> : vector<8x128xf32>
    %77 = tpu.matmul %73, %76, %cst_47 {dimension_numbers = #tpu.dot_dimension_numbers<[1], [0], [0], [1], [0, 0, 1, 1], [], []>} : vector<8x128xf32>, vector<128x128xf32>, vector<8x128xf32> -> vector<8x128xf32>
    %c0_48 = arith.constant 0 : index
    %c0_49 = arith.constant 0 : index
    %78 = vector.load %arg16[%c0_48, %c0_49] : memref<1x128xf32, #tpu.memory_space<vmem>>, vector<1x128xf32>
    %79 = vector.broadcast %78 : vector<1x128xf32> to vector<8x128xf32>
    %80 = arith.addf %77, %79 : vector<8x128xf32>
    %cst_50 = arith.constant 0.000000e+00 : f32
    %81 = vector.broadcast %cst_50 : f32 to vector<8x128xf32>
    %82 = arith.cmpf oge, %80, %81 : vector<8x128xf32>
    %cst_51 = arith.constant 0.00999999977 : f32
    %83 = vector.broadcast %cst_51 : f32 to vector<8x128xf32>
    %84 = arith.mulf %83, %80 : vector<8x128xf32>
    %85 = arith.select %82, %80, %84 : vector<8x128xi1>, vector<8x128xf32>
    %c0_52 = arith.constant 0 : index
    %c0_53 = arith.constant 0 : index
    %86 = vector.load %arg17[%c0_52, %c0_53] : memref<128x128xf32, #tpu.memory_space<vmem>>, vector<128x128xf32>
    %cst_54 = arith.constant dense<0.000000e+00> : vector<8x128xf32>
    %87 = tpu.matmul %85, %86, %cst_54 {dimension_numbers = #tpu.dot_dimension_numbers<[1], [0], [0], [1], [0, 0, 1, 1], [], []>} : vector<8x128xf32>, vector<128x128xf32>, vector<8x128xf32> -> vector<8x128xf32>
    %c0_55 = arith.constant 0 : index
    %c0_56 = arith.constant 0 : index
    %88 = vector.load %arg18[%c0_55, %c0_56] : memref<1x128xf32, #tpu.memory_space<vmem>>, vector<1x128xf32>
    %89 = vector.broadcast %88 : vector<1x128xf32> to vector<8x128xf32>
    %90 = arith.addf %87, %89 : vector<8x128xf32>
    %c0_57 = arith.constant 0 : index
    %c0_58 = arith.constant 0 : index
    %91 = vector.load %arg19[%c0_57, %c0_58] : memref<8x128xf32, #tpu.memory_space<vmem>>, vector<8x128xf32>
    tpu.vector_store %arg19[%c0_57, %c0_58], %90 {strides = array<i32>} : memref<8x128xf32, #tpu.memory_space<vmem>>, vector<8x128xf32>,
    return
  }
  func.func @transform_0(%arg0: i32) -> (i32, i32) {
    %c0_i32 = arith.constant 0 : i32
    %c0_i32_0 = arith.constant 0 : i32
    return %arg0, %c0_i32 : i32, i32
  }
  func.func @transform_1(%arg0: i32) -> (i32, i32) {
    %c0_i32 = arith.constant 0 : i32
    %c0_i32_0 = arith.constant 0 : i32
    return %arg0, %c0_i32 : i32, i32
  }
  func.func @transform_2(%arg0: i32) -> (i32, i32) {
    %c0_i32 = arith.constant 0 : i32
    %c0_i32_0 = arith.constant 0 : i32
    return %arg0, %c0_i32 : i32, i32
  }
  func.func @transform_3(%arg0: i32) -> (i32, i32) {
    %c0_i32 = arith.constant 0 : i32
    %c0_i32_0 = arith.constant 0 : i32
    return %arg0, %c0_i32 : i32, i32
  }
  func.func @transform_4(%arg0: i32) -> (i32, i32, i32) {
    %c0_i32 = arith.constant 0 : i32
    %c0_i32_0 = arith.constant 0 : i32
    %c0_i32_1 = arith.constant 0 : i32
    return %arg0, %c0_i32, %c0_i32_0 : i32, i32, i32
  }
  func.func @transform_5(%arg0: i32) -> (i32, i32, i32) {
    %c0_i32 = arith.constant 0 : i32
    %c0_i32_0 = arith.constant 0 : i32
    %c0_i32_1 = arith.constant 0 : i32
    return %arg0, %c0_i32, %c0_i32_0 : i32, i32, i32
  }
  func.func @transform_6(%arg0: i32) -> (i32, i32) {
    %c0_i32 = arith.constant 0 : i32
    %c0_i32_0 = arith.constant 0 : i32
    %c0_i32_1 = arith.constant 0 : i32
    return %c0_i32, %c0_i32_0 : i32, i32
  }
  func.func @transform_7(%arg0: i32) -> (i32, i32) {
    %c0_i32 = arith.constant 0 : i32
    %c0_i32_0 = arith.constant 0 : i32
    %c0_i32_1 = arith.constant 0 : i32
    return %c0_i32, %c0_i32_0 : i32, i32
  }
  func.func @transform_8(%arg0: i32) -> (i32, i32) {
    %c0_i32 = arith.constant 0 : i32
    %c0_i32_0 = arith.constant 0 : i32
    %c0_i32_1 = arith.constant 0 : i32
    return %c0_i32, %c0_i32_0 : i32, i32
  }
  func.func @transform_9(%arg0: i32) -> (i32, i32) {
    %c0_i32 = arith.constant 0 : i32
    %c0_i32_0 = arith.constant 0 : i32
    %c0_i32_1 = arith.constant 0 : i32
    return %c0_i32, %c0_i32_0 : i32, i32
  }
  func.func @transform_10(%arg0: i32) -> (i32, i32) {
    %c0_i32 = arith.constant 0 : i32
    %c0_i32_0 = arith.constant 0 : i32
    %c0_i32_1 = arith.constant 0 : i32
    return %c0_i32, %c0_i32_0 : i32, i32
  }
  func.func @transform_11(%arg0: i32) -> (i32, i32) {
    %c0_i32 = arith.constant 0 : i32
    %c0_i32_0 = arith.constant 0 : i32
    %c0_i32_1 = arith.constant 0 : i32
    return %c0_i32, %c0_i32_0 : i32, i32
  }
  func.func @transform_12(%arg0: i32) -> (i32, i32) {
    %c0_i32 = arith.constant 0 : i32
    %c0_i32_0 = arith.constant 0 : i32
    %c0_i32_1 = arith.constant 0 : i32
    return %c0_i32, %c0_i32_0 : i32, i32
  }
  func.func @transform_13(%arg0: i32) -> (i32, i32) {
    %c0_i32 = arith.constant 0 : i32
    %c0_i32_0 = arith.constant 0 : i32
    %c0_i32_1 = arith.constant 0 : i32
    return %c0_i32, %c0_i32_0 : i32, i32
  }
  func.func @transform_14(%arg0: i32) -> (i32, i32) {
    %c0_i32 = arith.constant 0 : i32
    %c0_i32_0 = arith.constant 0 : i32
    %c0_i32_1 = arith.constant 0 : i32
    return %c0_i32, %c0_i32_0 : i32, i32
  }
  func.func @transform_15(%arg0: i32) -> (i32, i32) {
    %c0_i32 = arith.constant 0 : i32
    %c0_i32_0 = arith.constant 0 : i32
    %c0_i32_1 = arith.constant 0 : i32
    return %c0_i32, %c0_i32_0 : i32, i32
  }
  func.func @transform_16(%arg0: i32) -> (i32, i32) {
    %c0_i32 = arith.constant 0 : i32
    %c0_i32_0 = arith.constant 0 : i32
    %c0_i32_1 = arith.constant 0 : i32
    return %c0_i32, %c0_i32_0 : i32, i32
  }
  func.func @transform_17(%arg0: i32) -> (i32, i32) {
    %c0_i32 = arith.constant 0 : i32
    %c0_i32_0 = arith.constant 0 : i32
    %c0_i32_1 = arith.constant 0 : i32
    return %c0_i32, %c0_i32_0 : i32, i32
  }
  func.func @transform_18(%arg0: i32) -> (i32, i32) {
    %c0_i32 = arith.constant 0 : i32
    %c0_i32_0 = arith.constant 0 : i32
    return %arg0, %c0_i32 : i32, i32
  }
  func.func @transform_19(%arg0: i32) -> (i32, i32) {
    %c0_i32 = arith.constant 0 : i32
    %c0_i32_0 = arith.constant 0 : i32
    return %arg0, %c0_i32 : i32, i32
  }
  func.func @transform_20(%arg0: i32) -> (i32, i32) {
    %c0_i32 = arith.constant 0 : i32
    %c0_i32_0 = arith.constant 0 : i32
    return %arg0, %c0_i32 : i32, i32
  }
  func.func @transform_21(%arg0: i32) -> (i32, i32) {
    %c0_i32 = arith.constant 0 : i32
    %c0_i32_0 = arith.constant 0 : i32
    return %arg0, %c0_i32 : i32, i32
  }
}

</mosaic_0001>

<bundles_post_ra>
// kernel: tpu_custom_call.1
= control target key start
LH: loop header
LB: loop body
LE: loop exit
PB: predicated region body
PF: predicated region fallthrough
CT: control target
= control target key end

     0   :  { %s3217_s0 = inlined_call_operand.hbm [shape: f32[8,128], index: 0, kind: input, shape index: {}]   ;;  %s3218_s1 = inlined_call_operand.hbm [shape: f32[8,128], index: 1, kind: input, shape index: {}]   ;;  %s3219_s2 = inlined_call_operand.vmem [shape: f32[8,128], index: 2, kind: input, shape index: {}]   ;;  %s3220_s3 = inlined_call_operand.hbm [shape: f32[8,128], index: 3, kind: input, shape index: {}]   ;;  %s3221_s4 = inlined_call_operand.hbm [shape: f32[8,8,128], index: 4, kind: input, shape index: {}]   ;;  %s3222_s5 = inlined_call_operand.hbm [shape: f32[8,8,128], index: 5, kind: input, shape index: {}]   ;;  %s3223_s6 = inlined_call_operand.hbm [shape: f32[128,128], index: 6, kind: input, shape index: {}]   ;;  %s3224_s7 = inlined_call_operand.vmem [shape: f32[1,128], index: 7, kind: input, shape index: {}]   ;;  %s3225_s8 = inlined_call_operand.vmem [shape: f32[1,128], index: 8, kind: input, shape index: {}]   ;;  %s3226_s9 = inlined_call_operand.<no memory space> [shape: f32[1,1], index: 9, kind: input, shape index: {}]   ;;  %s3227_s10 = inlined_call_operand.hbm [shape: f32[128,512], index: 10, kind: input, shape index: {}]   ;;  %s3228_s11 = inlined_call_operand.hbm [shape: f32[128,512], index: 11, kind: input, shape index: {}]   ;;  %s3229_s12 = inlined_call_operand.hbm [shape: f32[128,512], index: 12, kind: input, shape index: {}]   ;;  %s3230_s13 = inlined_call_operand.vmem [shape: f32[1,512], index: 13, kind: input, shape index: {}]   ;;  %s3231_s14 = inlined_call_operand.hbm [shape: f32[128,128], index: 14, kind: input, shape index: {}]   ;;  %s3232_s15 = inlined_call_operand.vmem [shape: f32[1,128], index: 15, kind: input, shape index: {}]   ;;  %s3233_s16 = inlined_call_operand.hbm [shape: f32[128,128], index: 16, kind: input, shape index: {}]   ;;  %s3234_s17 = inlined_call_operand.vmem [shape: f32[1,128], index: 17, kind: input, shape index: {}]   ;;  %s3235_s18 = inlined_call_operand.hbm [shape: f32[8,128], index: 18, kind: output, shape index: {0}]   ;;  %s3236_s19 = inlined_call_operand.hbm [shape: f32[8,128], index: 19, kind: output, shape index: {1}]   ;;  %s3237_s20 = inlined_call_operand.hbm [shape: f32[8,128], index: 20, kind: output, shape index: {2}]   ;;  %s3238_s21 = inlined_call_operand.hbm [shape: f32[8,8], index: 21, kind: output, shape index: {3}]  }
   0x1   :  { %3247 = sst [smem:[#allocation36_spill]] %s3217_s0 }
   0x2   :  { %3248 = sst [smem:[#allocation37_spill]] %s3218_s1 }
   0x3   :  { %3249 = sst [smem:[#allocation38_spill]] %s3219_s2 }
   0x4   :  { %3250 = sst [smem:[#allocation39_spill]] %s3220_s3 }
   0x5   :  { %3251 = sst [smem:[#allocation40_spill]] %s3221_s4 }
   0x6   :  { %3252 = sst [smem:[#allocation41_spill]] %s3222_s5 }
   0x7   :  { %3253 = sst [smem:[#allocation42_spill]] %s3235_s18 }
   0x8   :  { %28 = vsyncpa [#allocation4], 0 }
   0x9   :  { %29 = vsyncpa [#allocation7], 0 }
   0xa   :  { %30 = vsyncpa [#allocation10], 0 }
   0xb   :  { %31 = vsyncpa [#allocation13], 0 }
   0xc   :  { %32 = vsyncpa [#allocation16], 0 }
   0xd   :  { %33 = vsyncpa [#allocation19], 0 }
   0xe   :  { %34 = vsyncpa [#allocation5], 0 }
   0xf   :  { %35 = vsyncpa [#allocation23], 0 }
  0x10   :  { %36 = vsyncpa [#allocation26], 0  ;;  %s2658_s2 = smov [#allocation6]   ;;  %s2659_s26 = smov [#allocation9]  }
  0x11   :  { %s53_s25 = sshll.u32 %s2658_s2, 4  ;;  %s74_s27 = sshll.u32 %s2659_s26, 4  ;;  %s54_s25 = int_to_ptr.vmem [resolvable:$true] %s53_s25  ;;  %s2792_s27 = int_to_ptr.vmem [resolvable:$true] %s74_s27 }
  0x12   :  { %s3254_s29 = sld [smem:[#allocation37_spill]] }
  0x18   :  { %s2310_s0 = scalar_lea.hbm %s3254_s29, 128 }
  0x19   :  { %p2311_p0 = scmp.ne.s32.totalorder %s3254_s29, %s2310_s0  ;;  %p2314_p1 = scmp.lt.u32.totalorder %s2310_s0, %s3254_s29 }
  0x1b   :  { %p2316_p2 = pnand %p2314_p1, %p2311_p0 }
  0x1d   :  { %2319 = shalt.err (!%p2316_p2)
}
  0x1e   :  { %s2320_s23 = scalar_lea.vmem %s54_s25, 128  ;;  %p2325_p4 = scmp.lt.s32.totalorder %s54_s25, %s54_s25 }
  0x1f   :  { %p2321_p3 = scmp.ne.s32.totalorder %s54_s25, %s2320_s23  ;;  %p2326_p5 = scmp.lt.s32.totalorder %s2320_s23, %s2320_s23 }
  0x21   :  { %p2327_p6 = por %p2326_p5, %p2325_p4 }
  0x23   :  { %p2328_p7 = pnand %p2327_p6, %p2321_p3 }
  0x25   :  { %2331 = shalt.err (!%p2328_p7)
}
  0x26   :  { %56 = dma.hbm_to_vmem [thread:$0]  %s3254_s29, 128, %s54_s25, [#allocation7]  }
  0x27   :  { %s3255_s3 = sld [smem:[#allocation40_spill]] }
  0x2d   :  { %s2332_s28 = scalar_lea.hbm %s3255_s3, 1024 }
  0x2e   :  { %p2333_p8 = scmp.ne.s32.totalorder %s3255_s3, %s2332_s28  ;;  %p2336_p9 = scmp.lt.u32.totalorder %s2332_s28, %s3255_s3 }
  0x30   :  { %p2338_p10 = pnand %p2336_p9, %p2333_p8 }
  0x32   :  { %2341 = shalt.err (!%p2338_p10)
}
  0x33   :  { %s2342_s22 = scalar_lea.vmem %s2792_s27, 1024  ;;  %p2347_p12 = scmp.lt.s32.totalorder %s2792_s27, %s2792_s27 }
  0x34   :  { %p2343_p11 = scmp.ne.s32.totalorder %s2792_s27, %s2342_s22  ;;  %p2348_p13 = scmp.lt.s32.totalorder %s2342_s22, %s2342_s22 }
  0x36   :  { %p2349_p0 = por %p2348_p13, %p2347_p12 }
  0x38   :  { %p2350_p1 = pnand %p2349_p0, %p2343_p11 }
  0x3a   :  { %2353 = shalt.err (!%p2350_p1)
}
  0x3b   :  { %s2660_s25 = smov 128   ;;  %s2661_s29 = smov 8  }
  0x3c   :  { %80 = dma.hbm_to_vmem [thread:$0]  %s3255_s3, 1024, %s2792_s27, [#allocation10], %s2660_s25, %s2660_s25, %s2661_s29  }
  0x3d   :  { %s2662_s24 = smov [#allocation12]   ;;  %s2354_s4 = scalar_lea.hbm %s3223_s6, 2048 }
  0x3e   :  { %s98_s2 = sshll.u32 %s2662_s24, 4  ;;  %p2355_p2 = scmp.ne.s32.totalorder %s3223_s6, %s2354_s4  ;;  %s99_s2 = int_to_ptr.vmem [resolvable:$true] %s98_s2 }
  0x3f   :  { %p2358_p3 = scmp.lt.u32.totalorder %s2354_s4, %s3223_s6 }
  0x41   :  { %p2360_p4 = pnand %p2358_p3, %p2355_p2 }
  0x43   :  { %2363 = shalt.err (!%p2360_p4)
}
  0x44   :  { %s2364_s18 = scalar_lea.vmem %s99_s2, 2048  ;;  %p2369_p6 = scmp.lt.s32.totalorder %s99_s2, %s99_s2 }
  0x45   :  { %p2365_p5 = scmp.ne.s32.totalorder %s99_s2, %s2364_s18  ;;  %p2370_p7 = scmp.lt.s32.totalorder %s2364_s18, %s2364_s18 }
  0x47   :  { %p2371_p8 = por %p2370_p7, %p2369_p6 }
  0x49   :  { %p2372_p9 = pnand %p2371_p8, %p2365_p5 }
  0x4b   :  { %2375 = shalt.err (!%p2372_p9)
}
  0x4c   :  { %104 = dma.hbm_to_vmem [thread:$0]  %s3223_s6, 2048, %s99_s2, [#allocation13], %s2660_s25, %s2660_s25, %s2661_s29  }
  0x4d   :  { %s2663_s23 = smov [#allocation15]   ;;  %s2664_s24 = smov [#allocation18]  }
  0x4e   :  { %s128_s1 = sshll.u32 %s2663_s23, 4  ;;  %s154_s26 = sshll.u32 %s2664_s24, 4  ;;  %s129_s1 = int_to_ptr.vmem [resolvable:$true] %s128_s1  ;;  %s155_s26 = int_to_ptr.vmem [resolvable:$true] %s154_s26 }
  0x4f   :  { %s2376_s30 = scalar_lea.hbm %s3228_s11, 8192 }
  0x50   :  { %p2377_p10 = scmp.ne.s32.totalorder %s3228_s11, %s2376_s30  ;;  %p2380_p11 = scmp.lt.u32.totalorder %s2376_s30, %s3228_s11 }
  0x52   :  { %p2382_p12 = pnand %p2380_p11, %p2377_p10 }
  0x54   :  { %2385 = shalt.err (!%p2382_p12)
}
  0x55   :  { %s2386_s6 = scalar_lea.vmem %s129_s1, 8192  ;;  %p2391_p0 = scmp.lt.s32.totalorder %s129_s1, %s129_s1 }
  0x56   :  { %p2387_p13 = scmp.ne.s32.totalorder %s129_s1, %s2386_s6  ;;  %p2392_p1 = scmp.lt.s32.totalorder %s2386_s6, %s2386_s6 }
  0x58   :  { %p2393_p2 = por %p2392_p1, %p2391_p0 }
  0x5a   :  { %p2394_p3 = pnand %p2393_p2, %p2387_p13 }
  0x5c   :  { %2397 = shalt.err (!%p2394_p3)
}
  0x5d   :  { %s3245_s2 = smov 512   ;;  %s2666_s27 = smov 32  }
  0x5e   :  { %134 = dma.hbm_to_vmem [thread:$0]  %s3228_s11, 8192, %s129_s1, [#allocation16], %s3245_s2, %s3245_s2, %s2666_s27  }
  0x5f   :  { %s2398_s4 = scalar_lea.hbm %s3231_s14, 2048 }
  0x60   :  { %p2399_p4 = scmp.ne.s32.totalorder %s3231_s14, %s2398_s4  ;;  %p2402_p5 = scmp.lt.u32.totalorder %s2398_s4, %s3231_s14 }
  0x62   :  { %p2404_p6 = pnand %p2402_p5, %p2399_p4 }
  0x64   :  { %2407 = shalt.err (!%p2404_p6)
}
  0x65   :  { %s2408_s22 = scalar_lea.vmem %s155_s26, 2048  ;;  %p2413_p8 = scmp.lt.s32.totalorder %s155_s26, %s155_s26 }
  0x66   :  { %p2409_p7 = scmp.ne.s32.totalorder %s155_s26, %s2408_s22  ;;  %p2414_p9 = scmp.lt.s32.totalorder %s2408_s22, %s2408_s22 }
  0x68   :  { %p2415_p10 = por %p2414_p9, %p2413_p8 }
  0x6a   :  { %p2416_p11 = pnand %p2415_p10, %p2409_p7 }
  0x6c   :  { %2419 = shalt.err (!%p2416_p11)
}
  0x6d   :  { %160 = dma.hbm_to_vmem [thread:$0]  %s3231_s14, 2048, %s155_s26, [#allocation19], %s2660_s25, %s2660_s25, %s2661_s29  }
  0x6e   :  { %s2667_s6 = smov [#allocation3]   ;;  %s2668_s23 = smov [#allocation8]  }
  0x6f   :  { %s43_s3 = sshll.u32 %s2667_s6, 4  ;;  %s65_s24 = sshll.u32 %s2668_s23, 4  ;;  %s44_s3 = int_to_ptr.vmem [resolvable:$true] %s43_s3  ;;  %s66_s24 = int_to_ptr.vmem [resolvable:$true] %s65_s24 }
  0x70   :  { %s3256_s30 = sld [smem:[#allocation36_spill]] }
  0x76   :  { %s2420_s18 = scalar_lea.hbm %s3256_s30, 128 }
  0x77   :  { %p2421_p12 = scmp.ne.s32.totalorder %s3256_s30, %s2420_s18  ;;  %p2424_p13 = scmp.lt.u32.totalorder %s2420_s18, %s3256_s30 }
  0x79   :  { %p2426_p0 = pnand %p2424_p13, %p2421_p12 }
  0x7b   :  { %2429 = shalt.err (!%p2426_p0)
}
  0x7c   :  { %s2430_s14 = scalar_lea.vmem %s44_s3, 128  ;;  %p2435_p2 = scmp.lt.s32.totalorder %s44_s3, %s44_s3 }
  0x7d   :  { %p2431_p1 = scmp.ne.s32.totalorder %s44_s3, %s2430_s14  ;;  %p2436_p3 = scmp.lt.s32.totalorder %s2430_s14, %s2430_s14 }
  0x7f   :  { %p2437_p4 = por %p2436_p3, %p2435_p2 }
  0x81   :  { %p2438_p5 = pnand %p2437_p4, %p2431_p1 }
  0x83   :  { %2441 = shalt.err (!%p2438_p5)
}
  0x84   :  { %46 = dma.hbm_to_vmem [thread:$0]  %s3256_s30, 128, %s44_s3, [#allocation4]  }
  0x85   :  { %s3257_s23 = sld [smem:[#allocation39_spill]] }
  0x8b   :  { %s2442_s28 = scalar_lea.hbm %s3257_s23, 128 }
  0x8c   :  { %p2443_p6 = scmp.ne.s32.totalorder %s3257_s23, %s2442_s28  ;;  %p2446_p7 = scmp.lt.u32.totalorder %s2442_s28, %s3257_s23 }
  0x8e   :  { %p2448_p8 = pnand %p2446_p7, %p2443_p6 }
  0x90   :  { %2451 = shalt.err (!%p2448_p8)
}
  0x91   :  { %s2452_s5 = scalar_lea.vmem %s66_s24, 128  ;;  %p2457_p10 = scmp.lt.s32.totalorder %s66_s24, %s66_s24 }
  0x92   :  { %p2453_p9 = scmp.ne.s32.totalorder %s66_s24, %s2452_s5  ;;  %p2458_p11 = scmp.lt.s32.totalorder %s2452_s5, %s2452_s5 }
  0x94   :  { %p2459_p12 = por %p2458_p11, %p2457_p10 }
  0x96   :  { %p2460_p13 = pnand %p2459_p12, %p2453_p9 }
  0x98   :  { %2463 = shalt.err (!%p2460_p13)
}
  0x99   :  { %68 = dma.hbm_to_vmem [thread:$0]  %s3257_s23, 128, %s66_s24, [#allocation7]  }
  0x9a   :  { %s2669_s22 = smov [#allocation11]   ;;  %s2670_s26 = smov [#allocation14]  }
  0x9b   :  { %s86_s14 = sshll.u32 %s2669_s22, 4  ;;  %s116_s11 = sshll.u32 %s2670_s26, 4  ;;  %s87_s14 = int_to_ptr.vmem [resolvable:$true] %s86_s14  ;;  %s117_s11 = int_to_ptr.vmem [resolvable:$true] %s116_s11 }
  0x9c   :  { %s3258_s28 = sld [smem:[#allocation41_spill]] }
  0xa2   :  { %s2464_s2 = scalar_lea.hbm %s3258_s28, 1024 }
  0xa3   :  { %p2465_p0 = scmp.ne.s32.totalorder %s3258_s28, %s2464_s2  ;;  %p2468_p1 = scmp.lt.u32.totalorder %s2464_s2, %s3258_s28 }
  0xa5   :  { %p2470_p2 = pnand %p2468_p1, %p2465_p0 }
  0xa7   :  { %2473 = shalt.err (!%p2470_p2)
}
  0xa8   :  { %s2474_s24 = scalar_lea.vmem %s87_s14, 1024  ;;  %p2479_p4 = scmp.lt.s32.totalorder %s87_s14, %s87_s14 }
  0xa9   :  { %p2475_p3 = scmp.ne.s32.totalorder %s87_s14, %s2474_s24  ;;  %p2480_p5 = scmp.lt.s32.totalorder %s2474_s24, %s2474_s24 }
  0xab   :  { %p2481_p6 = por %p2480_p5, %p2479_p4 }
  0xad   :  { %p2482_p7 = pnand %p2481_p6, %p2475_p3 }
  0xaf   :  { %2485 = shalt.err (!%p2482_p7)
}
  0xb0   :  { %92 = dma.hbm_to_vmem [thread:$0]  %s3258_s28, 1024, %s87_s14, [#allocation10], %s2660_s25, %s2660_s25, %s2661_s29  }
  0xb1   :  { %s2486_s26 = scalar_lea.hbm %s3227_s10, 8192 }
  0xb2   :  { %p2487_p8 = scmp.ne.s32.totalorder %s3227_s10, %s2486_s26  ;;  %p2490_p9 = scmp.lt.u32.totalorder %s2486_s26, %s3227_s10 }
  0xb4   :  { %p2492_p10 = pnand %p2490_p9, %p2487_p8 }
  0xb6   :  { %2495 = shalt.err (!%p2492_p10)
}
  0xb7   :  { %s2496_s18 = scalar_lea.vmem %s117_s11, 8192  ;;  %p2501_p12 = scmp.lt.s32.totalorder %s117_s11, %s117_s11 }
  0xb8   :  { %p2497_p11 = scmp.ne.s32.totalorder %s117_s11, %s2496_s18  ;;  %p2502_p13 = scmp.lt.s32.totalorder %s2496_s18, %s2496_s18 }
  0xba   :  { %p2503_p0 = por %p2502_p13, %p2501_p12 }
  0xbc   :  { %p2504_p1 = pnand %p2503_p0, %p2497_p11 }
  0xbe   :  { %2507 = shalt.err (!%p2504_p1)
}
  0xbf   :  { %s3259_s14 = smov 512   ;;  %s2671_s5 = smov [#allocation17]  }
  0xc0   :  { %122 = dma.hbm_to_vmem [thread:$0]  %s3227_s10, 8192, %s117_s11, [#allocation13], %s3259_s14, %s3259_s14, %s2666_s27  }
  0xc1   :  { %s140_s24 = sshll.u32 %s2671_s5, 4  ;;  %s2672_s23 = smov [#allocation20]   ;;  %s141_s24 = int_to_ptr.vmem [resolvable:$true] %s140_s24 }
  0xc2   :  { %s168_s3 = sshll.u32 %s2672_s23, 4  ;;  %s2508_s26 = scalar_lea.hbm %s3229_s12, 8192  ;;  %s169_s3 = int_to_ptr.vmem [resolvable:$true] %s168_s3 }
  0xc3   :  { %p2509_p2 = scmp.ne.s32.totalorder %s3229_s12, %s2508_s26  ;;  %p2512_p3 = scmp.lt.u32.totalorder %s2508_s26, %s3229_s12 }
  0xc5   :  { %p2514_p4 = pnand %p2512_p3, %p2509_p2 }
  0xc7   :  { %2517 = shalt.err (!%p2514_p4)
}
  0xc8   :  { %s2518_s10 = scalar_lea.vmem %s141_s24, 8192  ;;  %p2523_p6 = scmp.lt.s32.totalorder %s141_s24, %s141_s24 }
  0xc9   :  { %p2519_p5 = scmp.ne.s32.totalorder %s141_s24, %s2518_s10  ;;  %p2524_p7 = scmp.lt.s32.totalorder %s2518_s10, %s2518_s10 }
  0xcb   :  { %p2525_p8 = por %p2524_p7, %p2523_p6 }
  0xcd   :  { %p2526_p9 = pnand %p2525_p8, %p2519_p5 }
  0xcf   :  { %2529 = shalt.err (!%p2526_p9)
}
  0xd0   :  { %146 = dma.hbm_to_vmem [thread:$0]  %s3229_s12, 8192, %s141_s24, [#allocation16], %s3259_s14, %s3259_s14, %s2666_s27  }
  0xd1   :  { %s2530_s5 = scalar_lea.hbm %s3233_s16, 2048 }
  0xd2   :  { %p2531_p10 = scmp.ne.s32.totalorder %s3233_s16, %s2530_s5  ;;  %p2534_p11 = scmp.lt.u32.totalorder %s2530_s5, %s3233_s16 }
  0xd4   :  { %p2536_p12 = pnand %p2534_p11, %p2531_p10 }
  0xd6   :  { %2539 = shalt.err (!%p2536_p12)
}
  0xd7   :  { %s2540_s1 = scalar_lea.vmem %s169_s3, 2048  ;;  %p2545_p0 = scmp.lt.s32.totalorder %s169_s3, %s169_s3 }
  0xd8   :  { %p2541_p13 = scmp.ne.s32.totalorder %s169_s3, %s2540_s1  ;;  %p2546_p1 = scmp.lt.s32.totalorder %s2540_s1, %s2540_s1 }
  0xda   :  { %p2547_p2 = por %p2546_p1, %p2545_p0 }
  0xdc   :  { %p2548_p3 = pnand %p2547_p2, %p2541_p13 }
  0xde   :  { %2551 = shalt.err (!%p2548_p3)
}
  0xdf   :  { %174 = dma.hbm_to_vmem [thread:$0]  %s3233_s16, 2048, %s169_s3, [#allocation19], %s2660_s25, %s2660_s25, %s2661_s29  }
  0xe0   :  { %2640 = dma.done.wait [#allocation4], 128  }
  0xe1   :  { %2641 = vsyncadd [#allocation4], 4294967168 }
  0xe2   :  { %2642 = dma.done.wait [#allocation7], 256  }
  0xe3   :  { %2643 = vsyncadd [#allocation7], 4294967040 }
  0xe4   :  { %2644 = dma.done.wait [#allocation10], 2048  }
  0xe5   :  { %2645 = vsyncadd [#allocation10], 4294965248 }
  0xe6   :  { %2646 = dma.done.wait [#allocation13], 10240  }
  0xe7   :  { %2647 = vsyncadd [#allocation13], 4294957056 }
  0xe8   :  { %2648 = dma.done.wait [#allocation16], 16384  }
  0xe9   :  { %2649 = vsyncadd [#allocation16], 4294950912 }
  0xea   :  { %2650 = dma.done.wait [#allocation19], 4096  }
  0xeb   :  { %2651 = vsyncadd [#allocation19], 4294963200  ;;  %v2673_v0 = vmov 0.0|0.0   ;;  %vm2674_vm0 = vmmov 0   ;;  %v2675_v1 = vmov 0.0   ;;  %v230_v2 = vld [vmem:[#allocation12] sm:$0xff]  ;;  %v328_v29 = vlaneseq }
  0xec   :  { %1962 = vmatprep.subr.bf16.mxu0 %v2673_v0  ;;  %1889 = vmatprep.mubr.msk.f32.mxu0 %vm2674_vm0, %v2675_v1  ;;  %v231_v3 = vld [vmem:[#allocation12 + $0x8] sm:$0xff]  ;;  %v232_v4 = vld [vmem:[#allocation12 + $0x10] sm:$0xff]  ;;  %v233_v6 = vld [vmem:[#allocation12 + $0x18] sm:$0xff]  ;;  %v2676_v27 = vmov 1966171168   ;;  %vm512_vm1 = vcmask 1041409  }
  0xed   :  { %1050 = vmatprep.mubr.f32.mxu1 %v2675_v1  ;;  %v1963_v5 = vpack.c.bf16 %v231_v3, %v230_v2  ;;  %v1966_v7 = vpack.c.bf16 %v233_v6, %v232_v4  ;;  %v234_v8 = vld [vmem:[#allocation12 + $0x20] sm:$0xff]  ;;  %v235_v9 = vld [vmem:[#allocation12 + $0x28] sm:$0xff]  ;;  %v236_v11 = vld [vmem:[#allocation12 + $0x30] sm:$0xff]  ;;  %v326_v28 = vunpack.c.l.s4 %v2676_v27  ;;  %v2968_v31 = vshrl.u32 %v328_v29, 7  ;;  %s3260_s6 = sld [smem:[#allocation38_spill]]  ;;  %s2678_s10 = smov [#allocation22]  }
  0xee   :  { %v1969_v10 = vpack.c.bf16 %v235_v9, %v234_v8  ;;  %v237_v12 = vld [vmem:[#allocation12 + $0x38] sm:$0xff]  ;;  %v238_v14 = vld [vmem:[#allocation12 + $0x40] sm:$0xff]  ;;  %v239_v15 = vld [vmem:[#allocation12 + $0x48] sm:$0xff]  ;;  %vm514_vm2 = vcmask 1042434   ;;  %vm516_vm3 = vcmask 1043459   ;;  %vm518_vm4 = vcmask 1044484  }
  0xef   :  { %1964 = vmatpush3.bf16.msra.mxu0 %v1963_v5  ;;  %v1972_v13 = vpack.c.bf16 %v237_v12, %v236_v11  ;;  %v1975_v16 = vpack.c.bf16 %v239_v15, %v238_v14  ;;  %v240_v17 = vld [vmem:[#allocation12 + $0x50] sm:$0xff]  ;;  %v241_v18 = vld [vmem:[#allocation12 + $0x58] sm:$0xff]  ;;  %v242_v20 = vld [vmem:[#allocation12 + $0x60] sm:$0xff]  ;;  %v327_v30 = vunpack.c.0.s8 %v326_v28  ;;  %v2975_v39 = vsub.s32 0, %v2968_v31  ;;  %s1754_s11 = sshll.u32 %s2678_s10, 4  ;;  %s1755_s11 = int_to_ptr.vmem [resolvable:$true] %s1754_s11 }
  0xf0   :  { %1965 = vmatprep.subr.bf16.mxu0 %v2673_v0  ;;  %v1978_v19 = vpack.c.bf16 %v241_v18, %v240_v17  ;;  %v243_v21 = vld [vmem:[#allocation12 + $0x68] sm:$0xff]  ;;  %v244_v23 = vld [vmem:[#allocation12 + $0x70] sm:$0xff]  ;;  %v245_v24 = vld [vmem:[#allocation12 + $0x78] sm:$0xff]  ;;  %vm520_vm5 = vcmask 1045509   ;;  %vm522_vm6 = vcmask 1046534   ;;  %vm524_vm7 = vcmask 1047559   ;;  %p2557_p5 = scmp.lt.s32.totalorder %s1755_s11, %s1755_s11 }
  0xf1   :  { %v1981_v22 = vpack.c.bf16 %v243_v21, %v242_v20  ;;  %v1984_v25 = vpack.c.bf16 %v245_v24, %v244_v23  ;;  %v213_v26 = vld [vmem:[#allocation8] sm:$0xff]  ;;  %v1799_v32 = vld [vmem:[%s3224_s7] ss:$0 sm:$0xff]  ;;  %v330_v33 = vsub.s32 %v327_v30, %v2968_v31  ;;  %v214_v43 = vld [vmem:[#allocation9] sm:$0xff]  ;;  %vm527_vm8 = vcmask 64512   ;;  %s2552_s18 = scalar_lea.vmem %s1755_s11, 128 }
  0xf2   :  { %v215_v49 = vld [vmem:[#allocation9 + $0x8] sm:$0xff]  ;;  %v216_v50 = vld [vmem:[#allocation9 + $0x10] sm:$0xff]  ;;  %v218_v54 = vld [vmem:[#allocation9 + $0x20] sm:$0xff]  ;;  %p2553_p4 = scmp.ne.s32.totalorder %s1755_s11, %s2552_s18  ;;  %p2558_p6 = scmp.lt.s32.totalorder %s2552_s18, %s2552_s18 }
  0xf3   :  { %1967 = vmatpush3.bf16.msra.mxu0 %v1966_v7  ;;  %v217_v59 = vld [vmem:[#allocation9 + $0x18] sm:$0xff]  ;;  %v219_v3 = vld [vmem:[#allocation9 + $0x28] sm:$0xff]  ;;  %v220_v7 = vld [vmem:[#allocation9 + $0x30] sm:$0xff] }
  0xf4   :  { %1968 = vmatprep.subr.bf16.mxu0 %v2673_v0  ;;  %v221_v11 = vld [vmem:[#allocation9 + $0x38] sm:$0xff]  ;;  %v1800_v12 = vld [vmem:[%s3225_s8] ss:$0 sm:$0xff]  ;;  %p2559_p7 = por %p2558_p6, %p2557_p5 }
  0xf6   :  { %p2560_p8 = pnand %p2559_p7, %p2553_p4 }
  0xf7   :  { %1970 = vmatpush3.bf16.msra.mxu0 %v1969_v10 }
  0xf8   :  { %1971 = vmatprep.subr.bf16.mxu0 %v2673_v0 }
  0xfb   :  { %1973 = vmatpush3.bf16.msra.mxu0 %v1972_v13 }
  0xfc   :  { %1974 = vmatprep.subr.bf16.mxu0 %v2673_v0 }
  0xff   :  { %1976 = vmatpush3.bf16.msra.mxu0 %v1975_v16 }
 0x100   :  { %1977 = vmatprep.subr.bf16.mxu0 %v2673_v0 }
 0x103   :  { %1979 = vmatpush3.bf16.msra.mxu0 %v1978_v19 }
 0x104   :  { %1980 = vmatprep.subr.bf16.mxu0 %v2673_v0 }
 0x107   :  { %1982 = vmatpush3.bf16.msra.mxu0 %v1981_v22 }
 0x108   :  { %1983 = vmatprep.subr.bf16.mxu0 %v2673_v0 }
 0x10b   :  { %1985 = vmatpush3.bf16.msra.mxu0 %v1984_v25 }
 0x10e   :  { %1890 = vmatmul.mubr.f32.vlgmr.msra.gmra.mrb[0].mxu0 %v213_v26 }
 0x10f   :  { %1121 = vmatprep.mubr.f32.mxu0 %v2675_v1 }
 0x1e1   :  { %v319_v34 = vpop.f32.mrb[0].mxu0 }
 0x1e2   :  { %v320_v35 = vadd.f32 %v1799_v32, %v319_v34  ;;  %v1891_v36 = vpop.f32.mrb[1].mxu0  ;;  %v479_v32 = vand.u32 127, %v328_v29 }
 0x1e4   :  { %v324_v37 = vcombine.high %v320_v35, %v320_v35  ;;  %v331_v38 = vrot.slane %v320_v35, %v330_v33  ;;  %v2993_v35 = vsub.s32 %v479_v32, %v2968_v31 }
 0x1e6   :  { %v338_v40 = vrot.slane %v324_v37, %v330_v33  ;;  %v339_v41 = vcombine.high %v331_v38, %v331_v38  ;;  %v347_v42 = vrot.slane %v331_v38, %v330_v33 }
 0x1e8   :  { %v340_v44 = vcombine.high %v338_v40, %v338_v40  ;;  %v354_v45 = vrot.slane %v338_v40, %v330_v33  ;;  %v361_v46 = vrot.slane %v339_v41, %v330_v33  ;;  %v369_v47 = vcombine.high %v347_v42, %v347_v42 }
 0x1e9   :  { %v376_v48 = vrot.slane %v347_v42, %v2975_v39 }
 0x1ea   :  { %v368_v51 = vrot.slane %v340_v44, %v330_v33  ;;  %v371_v52 = vcombine.high %v361_v46, %v361_v46  ;;  %v380_v53 = vrot.slane %v361_v46, %v2975_v39  ;;  %v370_v55 = vcombine.high %v354_v45, %v354_v45 }
 0x1eb   :  { %v384_v56 = vrot.slane %v369_v47, %v2975_v39  ;;  %v392_v57 = vrot.slane %v354_v45, %v2975_v39  ;;  %v413_v58 = vadd.f32 %v376_v48, %v214_v43  ;;  %v461_v33 = vstv %s3226_s9 }
 0x1ec   :  { %v388_v60 = vrot.slane %v371_v52, %v2975_v39  ;;  %v414_v61 = vadd.f32 %v380_v53, %v215_v49  ;;  %v396_v63 = vrot.slane %v368_v51, %v2975_v39  ;;  %v372_v4 = vcombine.high %v368_v51, %v368_v51 }
 0x1ed   :  { %v415_v62 = vadd.f32 %v384_v56, %v216_v50  ;;  %2260 = vtanh.f32 %v413_v58  ;;  %v417_v2 = vadd.f32 %v392_v57, %v218_v54  ;;  %v400_v5 = vrot.slane %v370_v55, %v2975_v39 }
 0x1ee   :  { %v416_v6 = vadd.f32 %v388_v60, %v217_v59  ;;  %2262 = vtanh.f32 %v414_v61  ;;  %v418_v8 = vadd.f32 %v396_v63, %v219_v3  ;;  %v404_v9 = vrot.slane %v372_v4, %v2975_v39 }
 0x1ef   :  { %2264 = vtanh.f32 %v415_v62  ;;  %v419_v10 = vadd.f32 %v400_v5, %v220_v7  ;;  %v2677_v5 = vmov 0   ;;  %v3015_v7 = vsub.s32 2, %v2968_v31 }
 0x1f0   :  { %2266 = vtanh.f32 %v417_v2  ;;  %v420_v14 = vadd.f32 %v404_v9, %v221_v11  ;;  %2259 = vset.pattern.permute.xlu0 %v2677_v5  ;;  %2258 = vset.pattern.permute.xlu1 %v2677_v5 }
 0x1f1   :  { %2268 = vtanh.f32 %v416_v6  ;;  %v3012_v6 = vsub.s32 1, %v2968_v31 }
 0x1f2   :  { %2270 = vtanh.f32 %v418_v8  ;;  %v3018_v8 = vsub.s32 3, %v2968_v31 }
 0x1f3   :  { %2272 = vtanh.f32 %v419_v10 }
 0x1f4   :  { %2274 = vtanh.f32 %v420_v14 }
 0x1f7   :  { %v2261_v13 = vpop.eup %2260 }
 0x1f8   :  { %v436_v15 = vmul.f32 %v2261_v13, %v1800_v12  ;;  %v2263_v16 = vpop.eup %2262  ;;  %v550_v13 = vsub.s32 4, %v2968_v31 }
 0x1f9   :  { %v2265_v17 = vpop.eup %2264  ;;  %v437_v20 = vmul.f32 %v2263_v16, %v1800_v12 }
 0x1fa   :  { %444 = vadd.xlane.f32.xlu0 %v436_v15  ;;  %v2267_v18 = vpop.eup %2266  ;;  %v438_v19 = vmul.f32 %v2265_v17, %v1800_v12 }
 0x1fb   :  { %v2269_v21 = vpop.eup %2268  ;;  %v440_v24 = vmul.f32 %v2267_v18, %v1800_v12 }
 0x1fc   :  { %448 = vadd.xlane.f32.xlu1 %v438_v19  ;;  %v2271_v22 = vpop.eup %2270  ;;  %v439_v23 = vmul.f32 %v2269_v21, %v1800_v12 }
 0x1fd   :  { %v2273_v25 = vpop.eup %2272  ;;  %v441_v26 = vmul.f32 %v2271_v22, %v1800_v12 }
 0x1fe   :  { %446 = vadd.xlane.f32.xlu0 %v437_v20  ;;  %v442_v27 = vmul.f32 %v2273_v25, %v1800_v12  ;;  %v2275_v28 = vpop.eup %2274  ;;  %v554_v20 = vsub.s32 5, %v2968_v31 }
 0x1ff   :  { %v443_v30 = vmul.f32 %v2275_v28, %v1800_v12  ;;  %v562_v28 = vsub.s32 7, %v2968_v31 }
 0x200   :  { %450 = vadd.xlane.f32.xlu1 %v439_v23 }
 0x202   :  { %452 = vadd.xlane.f32.xlu0 %v440_v24  ;;  %v558_v24 = vsub.s32 6, %v2968_v31 }
 0x204   :  { %454 = vadd.xlane.f32.xlu1 %v441_v26 }
 0x206   :  { %456 = vadd.xlane.f32.xlu0 %v442_v27 }
 0x208   :  { %458 = vadd.xlane.f32.xlu1 %v443_v30 }
 0x287   :  { %v445_v34 = vpop.xlane.xlu0 %444 }
 0x288   :  { %v462_v36 = vadd.f32 %v461_v33, %v445_v34 }
 0x289   :  { %v449_v37 = vpop.xlane.xlu1 %448 }
 0x28a   :  { %v464_v40 = vadd.f32 %v461_v33, %v449_v37  ;;  %v483_v42 = vrot.slane %v462_v36, %v2993_v35 }
 0x28b   :  { %v447_v38 = vpop.xlane.xlu0 %446 }
 0x28c   :  { %v463_v41 = vadd.f32 %v461_v33, %v447_v38  ;;  %v491_v29 = vrot.slane %v464_v40, %v2993_v35 }
 0x28d   :  { %v451_v44 = vpop.xlane.xlu1 %450 }
 0x28e   :  { %v487_v43 = vrot.slane %v463_v41, %v2993_v35  ;;  %v465_v47 = vadd.f32 %v461_v33, %v451_v44 }
 0x28f   :  { %v453_v45 = vpop.xlane.xlu0 %452 }
 0x290   :  { %v513_v46 = vsel %vm512_vm1, %v487_v43, %v483_v42  ;;  %v466_v48 = vadd.f32 %v461_v33, %v453_v45  ;;  %v495_v50 = vrot.slane %v465_v47, %v2993_v35 }
 0x291   :  { %v515_v49 = vsel %vm514_vm2, %v491_v29, %v513_v46  ;;  %v455_v52 = vpop.xlane.xlu1 %454 }
 0x292   :  { %v499_v51 = vrot.slane %v466_v48, %v2993_v35  ;;  %v517_v54 = vsel %vm516_vm3, %v495_v50, %v515_v49  ;;  %v467_v55 = vadd.f32 %v461_v33, %v455_v52 }
 0x293   :  { %v457_v53 = vpop.xlane.xlu0 %456 }
 0x294   :  { %v468_v56 = vadd.f32 %v461_v33, %v457_v53  ;;  %v519_v57 = vsel %vm518_vm4, %v499_v51, %v517_v54  ;;  %v503_v58 = vrot.slane %v467_v55, %v2993_v35 }
 0x295   :  { %v459_v60 = vpop.xlane.xlu1 %458 }
 0x296   :  { %v507_v59 = vrot.slane %v468_v56, %v2993_v35  ;;  %v469_v61 = vadd.f32 %v461_v33, %v459_v60  ;;  %v521_v62 = vsel %vm520_vm5, %v503_v58, %v519_v57 }
 0x298   :  { %v523_v63 = vsel %vm522_vm6, %v507_v59, %v521_v62  ;;  %v511_v2 = vrot.slane %v469_v61, %v2993_v35 }
 0x29a   :  { %v525_v3 = vsel %vm524_vm7, %v511_v2, %v523_v63 }
 0x29b   :  { %v528_v4 = vsel %vm527_vm8, %v525_v3, -inf }
 0x29c   :  { %529 = vmax.xlane.f32.xlu0 %v528_v4 }
 0x329   :  { %v530_v9 = vpop.xlane.xlu0 %529 }
 0x32a   :  { %v535_v10 = vrot.slane %v530_v9, %v2975_v39  ;;  %v539_v11 = vrot.slane %v530_v9, %v3012_v6  ;;  %v543_v12 = vrot.slane %v530_v9, %v3015_v7  ;;  %v547_v14 = vrot.slane %v530_v9, %v3018_v8 }
 0x32b   :  { %v551_v21 = vrot.slane %v530_v9, %v550_v13  ;;  %v555_v25 = vrot.slane %v530_v9, %v554_v20  ;;  %v559_v30 = vrot.slane %v530_v9, %v558_v24  ;;  %v563_v37 = vrot.slane %v530_v9, %v562_v28 }
 0x32c   :  { %v572_v15 = vsub.f32 %v462_v36, %v535_v10  ;;  %v573_v16 = vsub.f32 %v463_v41, %v539_v11  ;;  %v574_v17 = vsub.f32 %v464_v40, %v543_v12  ;;  %v575_v22 = vsub.f32 %v465_v47, %v547_v14 }
 0x32d   :  { %v576_v26 = vsub.f32 %v466_v48, %v551_v21  ;;  %v577_v32 = vsub.f32 %v467_v55, %v555_v25  ;;  %v578_v38 = vsub.f32 %v468_v56, %v559_v30  ;;  %v579_v42 = vsub.f32 %v469_v61, %v563_v37  ;;  %v922_v21 = vld [vmem:[#allocation15] sm:$0xff]  ;;  %v931_v30 = vld [vmem:[#allocation15 + $0x48] sm:$0xff]  ;;  %v933_v37 = vld [vmem:[#allocation15 + $0x58] sm:$0xff] }
 0x32e   :  { %v580_v18 = vmul.f32 1.442695, %v572_v15  ;;  %v582_v19 = vmul.f32 1.442695, %v573_v16  ;;  %v584_v23 = vmul.f32 1.442695, %v574_v17 }
 0x32f   :  { %v586_v27 = vmul.f32 1.442695, %v575_v22  ;;  %v588_v33 = vmul.f32 1.442695, %v576_v26  ;;  %v590_v40 = vmul.f32 1.442695, %v577_v32 }
 0x330   :  { %2276 = vpow2.f32 %v580_v18  ;;  %v592_v43 = vmul.f32 1.442695, %v578_v38  ;;  %v594_v44 = vmul.f32 1.442695, %v579_v42  ;;  %v923_v15 = vld [vmem:[#allocation15 + $0x8] sm:$0xff]  ;;  %v925_v17 = vld [vmem:[#allocation15 + $0x18] sm:$0xff] }
 0x331   :  { %2278 = vpow2.f32 %v582_v19  ;;  %v927_v16 = vld [vmem:[#allocation15 + $0x28] sm:$0xff]  ;;  %v929_v19 = vld [vmem:[#allocation15 + $0x38] sm:$0xff]  ;;  %v926_v22 = vld [vmem:[#allocation15 + $0x20] sm:$0xff] }
 0x332   :  { %2280 = vpow2.f32 %v584_v23  ;;  %v1986_v18 = vpack.c.bf16 %v927_v16, %v923_v15  ;;  %v2018_v23 = vpack.c.bf16 %v929_v19, %v925_v17  ;;  %v1988_v25 = vpack.c.bf16 %v926_v22, %v922_v21  ;;  %v924_v26 = vld [vmem:[#allocation15 + $0x10] sm:$0xff]  ;;  %v937_v38 = vld [vmem:[#allocation15 + $0x78] sm:$0xff]  ;;  %v955_v17 = vld [vmem:[#allocation15 + $0x108] sm:$0xff] }
 0x333   :  { %2282 = vpow2.f32 %v586_v27  ;;  %v928_v27 = vld [vmem:[#allocation15 + $0x30] sm:$0xff]  ;;  %v2022_v42 = vpack.c.bf16 %v937_v38, %v933_v37  ;;  %v957_v19 = vld [vmem:[#allocation15 + $0x118] sm:$0xff]  ;;  %v963_v37 = vld [vmem:[#allocation15 + $0x148] sm:$0xff] }
 0x334   :  { %2284 = vpow2.f32 %v588_v33  ;;  %1987 = vmatprep.subr.bf16.mxu1 %v1986_v18  ;;  %v2020_v32 = vpack.c.bf16 %v928_v27, %v924_v26  ;;  %v935_v33 = vld [vmem:[#allocation15 + $0x68] sm:$0xff]  ;;  %2019 = vmatprep.subr.bf16.mxu0 %v2018_v23  ;;  %v948_v15 = vld [vmem:[#allocation15 + $0xd0] sm:$0xff]  ;;  %v961_v21 = vld [vmem:[#allocation15 + $0x138] sm:$0xff] }
 0x335   :  { %2286 = vpow2.f32 %v590_v40  ;;  %1989 = vmatpush1.bf16.msra.mxu1 %v1988_v25  ;;  %v1990_v40 = vpack.c.bf16 %v935_v33, %v931_v30  ;;  %v952_v16 = vld [vmem:[#allocation15 + $0xf0] sm:$0xff]  ;;  %v959_v18 = vld [vmem:[#allocation15 + $0x128] sm:$0xff]  ;;  %v954_v26 = vld [vmem:[#allocation15 + $0x100] sm:$0xff] }
 0x336   :  { %2288 = vpow2.f32 %v592_v43  ;;  %v930_v43 = vld [vmem:[#allocation15 + $0x40] sm:$0xff]  ;;  %2021 = vmatpush1.bf16.msra.mxu0 %v2020_v32  ;;  %v2032_v23 = vpack.c.bf16 %v952_v16, %v948_v15  ;;  %v2002_v25 = vpack.c.bf16 %v959_v18, %v955_v17  ;;  %v956_v30 = vld [vmem:[#allocation15 + $0x110] sm:$0xff]  ;;  %v2034_v32 = vpack.c.bf16 %v961_v21, %v957_v19  ;;  %v967_v38 = vld [vmem:[#allocation15 + $0x168] sm:$0xff] }
 0x337   :  { %2290 = vpow2.f32 %v594_v44  ;;  %v934_v44 = vld [vmem:[#allocation15 + $0x60] sm:$0xff]  ;;  %1991 = vmatprep.subr.bf16.mxu1 %v1990_v40  ;;  %2023 = vmatprep.subr.bf16.mxu0 %v2022_v42  ;;  %v960_v33 = vld [vmem:[#allocation15 + $0x130] sm:$0xff]  ;;  %v965_v40 = vld [vmem:[#allocation15 + $0x158] sm:$0xff] }
 0x338   :  { %v958_v27 = vld [vmem:[#allocation15 + $0x120] sm:$0xff]  ;;  %v969_v42 = vld [vmem:[#allocation15 + $0x178] sm:$0xff]  ;;  %v976_v16 = vld [vmem:[#allocation15 + $0x1b0] sm:$0xff] }
 0x339   :  { %v979_v19 = vld [vmem:[#allocation15 + $0x1c8] sm:$0xff] }
 0x33a   :  { %v3034_v34 = vpop.eup %2276  ;;  %v983_v21 = vld [vmem:[#allocation15 + $0x1e8] sm:$0xff] }
 0x33b   :  { %v3036_v36 = vpop.eup %2278  ;;  %605 = vperm.xlu1 %2258, %v3034_v34  }
 0x33c   :  { %608 = vperm.xlu0 %2259, %v3036_v36   ;;  %v3042_v41 = vpop.eup %2280 }
 0x33d   :  { %v3045_v29 = vpop.eup %2282 }
 0x33e   :  { %v3048_v45 = vpop.eup %2284 }
 0x33f   :  { %611 = vperm.xlu1 %2258, %v3042_v41   ;;  %v3051_v46 = vpop.eup %2286 }
 0x340   :  { %v3054_v47 = vpop.eup %2288 }
 0x341   :  { %v3057_v48 = vpop.eup %2290 }
 0x343   :  { %614 = vperm.xlu1 %2258, %v3045_v29  }
 0x347   :  { %617 = vperm.xlu1 %2258, %v3048_v45  }
 0x34b   :  { %620 = vperm.xlu1 %2258, %v3051_v46  }
 0x34f   :  { %623 = vperm.xlu1 %2258, %v3054_v47  }
 0x353   :  { %626 = vperm.xlu1 %2258, %v3057_v48  }
 0x3ba   :  { %v606_v49 = vpop.permute.xlu1 %605 }
 0x3bb   :  { %v609_v53 = vpop.permute.xlu0 %608  ;;  %v631_v56 = vrot.slane %v606_v49, %v2993_v35  ;;  %v932_v49 = vld [vmem:[#allocation15 + $0x50] sm:$0xff] }
 0x3bc   :  { %v635_v55 = vrot.slane %v609_v53, %v2993_v35  ;;  %v943_v53 = vld [vmem:[#allocation15 + $0xa8] sm:$0xff] }
 0x3be   :  { %v612_v50 = vpop.permute.xlu1 %611  ;;  %v660_v61 = vsel %vm512_vm1, %v635_v55, %v631_v56  ;;  %v941_v56 = vld [vmem:[#allocation15 + $0x98] sm:$0xff] }
 0x3bf   :  { %v639_v57 = vrot.slane %v612_v50, %v2993_v35  ;;  %v1992_v50 = vpack.c.bf16 %v934_v44, %v930_v43  ;;  %v2004_v43 = vpack.c.bf16 %v958_v27, %v954_v26  ;;  %v2036_v44 = vpack.c.bf16 %v960_v33, %v956_v30  ;;  %v978_v26 = vld [vmem:[#allocation15 + $0x1c0] sm:$0xff]  ;;  %v984_v33 = vld [vmem:[#allocation15 + $0x1f0] sm:$0xff] }
 0x3c0   :  { %v982_v30 = vld [vmem:[#allocation15 + $0x1e0] sm:$0xff] }
 0x3c1   :  { %v661_v63 = vsel %vm514_vm2, %v639_v57, %v660_v61  ;;  %v945_v57 = vld [vmem:[#allocation15 + $0xb8] sm:$0xff]  ;;  %v940_v61 = vld [vmem:[#allocation15 + $0x90] sm:$0xff]  ;;  %1993 = vmatpush1.bf16.msra.mxu1 %v1992_v50  ;;  %v962_v50 = vld [vmem:[#allocation15 + $0x140] sm:$0xff] }
 0x3c2   :  { %v615_v51 = vpop.permute.xlu1 %614 }
 0x3c3   :  { %v643_v58 = vrot.slane %v615_v51, %v2993_v35  ;;  %v936_v51 = vld [vmem:[#allocation15 + $0x70] sm:$0xff] }
 0x3c5   :  { %v662_v3 = vsel %vm516_vm3, %v643_v58, %v661_v63  ;;  %v938_v58 = vld [vmem:[#allocation15 + $0x80] sm:$0xff] }
 0x3c6   :  { %v618_v52 = vpop.permute.xlu1 %617 }
 0x3c7   :  { %v647_v59 = vrot.slane %v618_v52, %v2993_v35  ;;  %v939_v52 = vld [vmem:[#allocation15 + $0x88] sm:$0xff] }
 0x3c8   :  { %v1994_v55 = vpack.c.bf16 %v943_v53, %v939_v52  ;;  %v2038_v52 = vpack.c.bf16 %v969_v42, %v965_v40  ;;  %v964_v53 = vld [vmem:[#allocation15 + $0x150] sm:$0xff]  ;;  %v859_v40 = vld [vmem:[#allocation14 + $0x8] sm:$0xff] }
 0x3c9   :  { %v663_v4 = vsel %vm518_vm4, %v647_v59, %v662_v3  ;;  %v2026_v59 = vpack.c.bf16 %v945_v57, %v941_v56  ;;  %v951_v3 = vld [vmem:[#allocation15 + $0xe8] sm:$0xff] }
 0x3ca   :  { %v621_v54 = vpop.permute.xlu1 %620  ;;  %1995 = vmatprep.subr.bf16.mxu1 %v1994_v55  ;;  %v863_v42 = vld [vmem:[#allocation14 + $0x28] sm:$0xff] }
 0x3cb   :  { %v651_v62 = vrot.slane %v621_v54, %v2993_v35  ;;  %v2024_v54 = vpack.c.bf16 %v936_v51, %v932_v49  ;;  %v2006_v49 = vpack.c.bf16 %v967_v38, %v963_v37  ;;  %v966_v51 = vld [vmem:[#allocation15 + $0x160] sm:$0xff] }
 0x3cc   :  { %v2008_v55 = vpack.c.bf16 %v966_v51, %v962_v50  ;;  %v858_v50 = vld [vmem:[#allocation14] sm:$0xff] }
 0x3cd   :  { %v664_v9 = vsel %vm520_vm5, %v651_v62, %v663_v4  ;;  %v944_v62 = vld [vmem:[#allocation15 + $0xb0] sm:$0xff]  ;;  %v949_v4 = vld [vmem:[#allocation15 + $0xd8] sm:$0xff]  ;;  %2025 = vmatpush1.bf16.msra.mxu0 %v2024_v54 }
 0x3ce   :  { %v624_v60 = vpop.permute.xlu1 %623  ;;  %2027 = vmatprep.subr.bf16.mxu0 %v2026_v59  ;;  %v968_v54 = vld [vmem:[#allocation15 + $0x170] sm:$0xff] }
 0x3cf   :  { %v655_v2 = vrot.slane %v624_v60, %v2993_v35  ;;  %v942_v60 = vld [vmem:[#allocation15 + $0xa0] sm:$0xff]  ;;  %v2040_v56 = vpack.c.bf16 %v968_v54, %v964_v53  ;;  %v860_v53 = vld [vmem:[#allocation14 + $0x10] sm:$0xff] }
 0x3d0   :  { %v1996_v63 = vpack.c.bf16 %v942_v60, %v938_v58  ;;  %v864_v54 = vld [vmem:[#allocation14 + $0x30] sm:$0xff] }
 0x3d1   :  { %v665_v11 = vsel %vm522_vm6, %v655_v2, %v664_v9  ;;  %v947_v2 = vld [vmem:[#allocation15 + $0xc8] sm:$0xff] }
 0x3d2   :  { %v627_v5 = vpop.permute.xlu1 %626  ;;  %v1998_v9 = vpack.c.bf16 %v951_v3, %v947_v2  ;;  %1997 = vmatpush1.bf16.msra.mxu1 %v1996_v63 }
 0x3d3   :  { %v659_v10 = vrot.slane %v627_v5, %v2993_v35  ;;  %v2028_v5 = vpack.c.bf16 %v944_v62, %v940_v61 }
 0x3d4   :  { %1999 = vmatprep.subr.bf16.mxu1 %v1998_v9  ;;  %v973_v9 = vld [vmem:[#allocation15 + $0x198] sm:$0xff] }
 0x3d5   :  { %v666_v12 = vsel %vm524_vm7, %v659_v10, %v665_v11  ;;  %v953_v10 = vld [vmem:[#allocation15 + $0xf8] sm:$0xff]  ;;  %v946_v11 = vld [vmem:[#allocation15 + $0xc0] sm:$0xff]  ;;  %2029 = vmatpush1.bf16.msra.mxu0 %v2028_v5  ;;  %v975_v5 = vld [vmem:[#allocation15 + $0x1a8] sm:$0xff] }
 0x3d6   :  { %v668_v14 = vsel %vm527_vm8, %v666_v12, 0.0  ;;  %v950_v12 = vld [vmem:[#allocation15 + $0xe0] sm:$0xff] }
 0x3d7   :  { %669 = vadd.xlane.f32.xlu1 %v668_v14  ;;  %v2030_v14 = vpack.c.bf16 %v953_v10, %v949_v4  ;;  %v2000_v22 = vpack.c.bf16 %v950_v12, %v946_v11  ;;  %v971_v4 = vld [vmem:[#allocation15 + $0x188] sm:$0xff]  ;;  %v970_v11 = vld [vmem:[#allocation15 + $0x180] sm:$0xff] }
 0x3d8   :  { %v2010_v10 = vpack.c.bf16 %v975_v5, %v971_v4  ;;  %v974_v12 = vld [vmem:[#allocation15 + $0x1a0] sm:$0xff]  ;;  %v868_v5 = vld [vmem:[#allocation14 + $0x50] sm:$0xff] }
 0x3d9   :  { %2031 = vmatprep.subr.bf16.mxu0 %v2030_v14  ;;  %2001 = vmatpush1.bf16.msra.mxu1 %v2000_v22  ;;  %v2012_v15 = vpack.c.bf16 %v974_v12, %v970_v11  ;;  %v2014_v22 = vpack.c.bf16 %v983_v21, %v979_v19  ;;  %v870_v4 = vld [vmem:[#allocation14 + $0x60] sm:$0xff]  ;;  %v875_v11 = vld [vmem:[#allocation14 + $0x88] sm:$0xff] }
 0x3da   :  { %2033 = vmatpush1.bf16.msra.mxu0 %v2032_v23  ;;  %2003 = vmatprep.subr.bf16.mxu1 %v2002_v25  ;;  %v981_v23 = vld [vmem:[#allocation15 + $0x1d8] sm:$0xff]  ;;  %v879_v12 = vld [vmem:[#allocation14 + $0xa8] sm:$0xff] }
 0x3db   :  { %2035 = vmatprep.subr.bf16.mxu0 %v2034_v32  ;;  %v985_v25 = vld [vmem:[#allocation15 + $0x1f8] sm:$0xff]  ;;  %v980_v32 = vld [vmem:[#allocation15 + $0x1d0] sm:$0xff]  ;;  %v887_v21 = vld [vmem:[#allocation14 + $0xe8] sm:$0xff] }
 0x3dc   :  { %v2046_v27 = vpack.c.bf16 %v985_v25, %v981_v23  ;;  %v2048_v37 = vpack.c.bf16 %v984_v33, %v980_v32  ;;  %v885_v23 = vld [vmem:[#allocation14 + $0xd8] sm:$0xff]  ;;  %v884_v32 = vld [vmem:[#allocation14 + $0xd0] sm:$0xff] }
 0x3dd   :  { %2005 = vmatpush1.bf16.msra.mxu1 %v2004_v43  ;;  %v2050_v43 = vpack.c.bf16 %v863_v42, %v859_v40  ;;  %v889_v25 = vld [vmem:[#allocation14 + $0xf8] sm:$0xff]  ;;  %v888_v33 = vld [vmem:[#allocation14 + $0xf0] sm:$0xff] }
 0x3de   :  { %2037 = vmatpush1.bf16.msra.mxu0 %v2036_v44  ;;  %2007 = vmatprep.subr.bf16.mxu1 %v2006_v49  ;;  %v861_v44 = vld [vmem:[#allocation14 + $0x18] sm:$0xff] }
 0x3df   :  { %2039 = vmatprep.subr.bf16.mxu0 %v2038_v52  ;;  %v865_v49 = vld [vmem:[#allocation14 + $0x38] sm:$0xff]  ;;  %v862_v52 = vld [vmem:[#allocation14 + $0x20] sm:$0xff] }
 0x3e0   :  { %v2082_v51 = vpack.c.bf16 %v865_v49, %v861_v44  ;;  %v893_v40 = vld [vmem:[#allocation14 + $0x118] sm:$0xff]  ;;  %v894_v49 = vld [vmem:[#allocation14 + $0x120] sm:$0xff] }
 0x3e1   :  { %2009 = vmatpush1.bf16.msra.mxu1 %v2008_v55  ;;  %v2052_v55 = vpack.c.bf16 %v862_v52, %v858_v50  ;;  %v897_v42 = vld [vmem:[#allocation14 + $0x138] sm:$0xff]  ;;  %v892_v50 = vld [vmem:[#allocation14 + $0x110] sm:$0xff] }
 0x3e2   :  { %2041 = vmatpush1.bf16.msra.mxu0 %v2040_v56  ;;  %2011 = vmatprep.subr.bf16.mxu1 %v2010_v10  ;;  %v2084_v56 = vpack.c.bf16 %v864_v54, %v860_v53  ;;  %v2098_v44 = vpack.c.bf16 %v897_v42, %v893_v40  ;;  %v899_v54 = vld [vmem:[#allocation14 + $0x148] sm:$0xff] }
 0x3e5   :  { %2013 = vmatpush1.bf16.msra.mxu1 %v2012_v15  ;;  %v877_v15 = vld [vmem:[#allocation14 + $0x98] sm:$0xff] }
 0x3e6   :  { %2015 = vmatprep.subr.bf16.mxu1 %v2014_v22 }
 0x464   :  { %v670_v57 = vpop.xlane.xlu1 %669 }
 0x465   :  { %2292 = vrcp.f32 %v670_v57 }
 0x46f   :  { %v3076_v58 = vpop.eup %2292 }
 0x470   :  { %v676_v59 = vrot.slane %v3076_v58, %v2975_v39  ;;  %v680_v61 = vrot.slane %v3076_v58, %v3012_v6  ;;  %v684_v63 = vrot.slane %v3076_v58, %v3015_v7  ;;  %v688_v3 = vrot.slane %v3076_v58, %v3018_v8 }
 0x471   :  { %v700_v57 = vrot.slane %v3076_v58, %v558_v24 }
 0x472   :  { %v713_v60 = vmul.f32 %v3034_v34, %v676_v59  ;;  %v714_v62 = vmul.f32 %v3036_v36, %v680_v61  ;;  %v715_v2 = vmul.f32 %v3042_v41, %v684_v63  ;;  %v977_v34 = vld [vmem:[#allocation15 + $0x1b8] sm:$0xff]  ;;  %v972_v36 = vld [vmem:[#allocation15 + $0x190] sm:$0xff]  ;;  %v716_v18 = vmul.f32 %v3045_v29, %v688_v3  ;;  %v867_v59 = vld [vmem:[#allocation14 + $0x48] sm:$0xff] }
 0x473   :  { %v2042_v14 = vpack.c.bf16 %v977_v34, %v973_v9  ;;  %v2044_v17 = vpack.c.bf16 %v976_v16, %v972_v36  ;;  %v692_v41 = vrot.slane %v3076_v58, %v550_v13  ;;  %v2016_v29 = vpack.c.bf16 %v982_v30, %v978_v26  ;;  %v873_v63 = vld [vmem:[#allocation14 + $0x78] sm:$0xff]  ;;  %v874_v16 = vld [vmem:[#allocation14 + $0x80] sm:$0xff] }
 0x474   :  { %730 = vperm.xlu0 %2259, %v713_v60   ;;  %v696_v13 = vrot.slane %v3076_v58, %v554_v20  ;;  %v871_v60 = vld [vmem:[#allocation14 + $0x68] sm:$0xff]  ;;  %v719_v24 = vmul.f32 %v3054_v47, %v700_v57  ;;  %v704_v34 = vrot.slane %v3076_v58, %v562_v28  ;;  %v881_v36 = vld [vmem:[#allocation14 + $0xb8] sm:$0xff]  ;;  %v880_v47 = vld [vmem:[#allocation14 + $0xb0] sm:$0xff] }
 0x475   :  { %2043 = vmatprep.subr.bf16.mxu0 %v2042_v14  ;;  %v717_v38 = vmul.f32 %v3048_v45, %v692_v41  ;;  %2017 = vmatpush1.bf16.msra.mxu1 %v2016_v29  ;;  %v210_v45 = vld [vmem:[#allocation3] sm:$0xff]  ;;  %v2054_v61 = vpack.c.bf16 %v871_v60, %v867_v59  ;;  %v2058_v14 = vpack.c.bf16 %v879_v12, %v875_v11  ;;  %v876_v41 = vld [vmem:[#allocation14 + $0x90] sm:$0xff]  ;;  %v882_v26 = vld [vmem:[#allocation14 + $0xc0] sm:$0xff] }
 0x476   :  { %2045 = vmatpush1.bf16.msra.mxu0 %v2044_v17  ;;  %2051 = vmatprep.subr.bf16.mxu1 %v2050_v43  ;;  %v718_v20 = vmul.f32 %v3051_v46, %v696_v13  ;;  %v872_v46 = vld [vmem:[#allocation14 + $0x70] sm:$0xff]  ;;  %v2090_v17 = vpack.c.bf16 %v881_v36, %v877_v15  ;;  %v2092_v19 = vpack.c.bf16 %v880_v47, %v876_v41  ;;  %v883_v58 = vld [vmem:[#allocation14 + $0xc8] sm:$0xff]  ;;  %v886_v30 = vld [vmem:[#allocation14 + $0xe0] sm:$0xff] }
 0x477   :  { %2047 = vmatprep.subr.bf16.mxu0 %v2046_v27  ;;  %v2088_v10 = vpack.c.bf16 %v872_v46, %v868_v5  ;;  %v720_v28 = vmul.f32 %v3057_v48, %v704_v34  ;;  %v2062_v22 = vpack.c.bf16 %v887_v21, %v883_v58  ;;  %v2094_v27 = vpack.c.bf16 %v889_v25, %v885_v23  ;;  %v895_v48 = vld [vmem:[#allocation14 + $0x128] sm:$0xff]  ;;  %v890_v43 = vld [vmem:[#allocation14 + $0x100] sm:$0xff]  ;;  %v909_v5 = vld [vmem:[#allocation14 + $0x198] sm:$0xff] }
 0x478   :  { %733 = vperm.xlu0 %2259, %v714_v62   ;;  %1051 = vmatmul.mubr.f32.vlgmr.msra.gmra.mrb[0].mxu1 %v210_v45  ;;  %v869_v62 = vld [vmem:[#allocation14 + $0x58] sm:$0xff]  ;;  %v2064_v29 = vpack.c.bf16 %v886_v30, %v882_v26  ;;  %v2068_v52 = vpack.c.bf16 %v894_v49, %v890_v43  ;;  %v898_v57 = vld [vmem:[#allocation14 + $0x140] sm:$0xff]  ;;  %v908_v12 = vld [vmem:[#allocation14 + $0x190] sm:$0xff] }
 0x479   :  { %2053 = vmatpush1.bf16.msra.mxu1 %v2052_v55  ;;  %v2086_v3 = vpack.c.bf16 %v873_v63, %v869_v62  ;;  %1208 = vmatprep.mubr.f32.mxu1 %v2675_v1  ;;  %v902_v60 = vld [vmem:[#allocation14 + $0x160] sm:$0xff]  ;;  %v904_v62 = vld [vmem:[#allocation14 + $0x170] sm:$0xff]  ;;  %v915_v36 = vld [vmem:[#allocation14 + $0x1c8] sm:$0xff] }
 0x47a   :  { %2049 = vmatpush1.bf16.msra.mxu0 %v2048_v37  ;;  %2055 = vmatprep.subr.bf16.mxu1 %v2054_v61  ;;  %v2096_v37 = vpack.c.bf16 %v888_v33, %v884_v32  ;;  %v900_v61 = vld [vmem:[#allocation14 + $0x150] sm:$0xff]  ;;  %v2072_v63 = vpack.c.bf16 %v902_v60, %v898_v57  ;;  %v921_v41 = vld [vmem:[#allocation14 + $0x1f8] sm:$0xff]  ;;  %v914_v47 = vld [vmem:[#allocation14 + $0x1c0] sm:$0xff] }
 0x47b   :  { %2083 = vmatprep.subr.bf16.mxu0 %v2082_v51  ;;  %v896_v51 = vld [vmem:[#allocation14 + $0x130] sm:$0xff]  ;;  %v1291_v25 = vld [vmem:[#allocation17 + $0x28] sm:$0xff]  ;;  %v1289_v26 = vld [vmem:[#allocation17 + $0x18] sm:$0xff] }
 0x47c   :  { %736 = vperm.xlu0 %2259, %v715_v2   ;;  %v866_v2 = vld [vmem:[#allocation14 + $0x40] sm:$0xff]  ;;  %v2100_v53 = vpack.c.bf16 %v896_v51, %v892_v50  ;;  %v916_v58 = vld [vmem:[#allocation14 + $0x1d0] sm:$0xff]  ;;  %v225_v43 = vld [vmem:[#allocation11 + $0x18] sm:$0xff] }
 0x47d   :  { %1122 = vmatmul.mubr.f32.vlgmr.msra.gmra.mrb[2].mxu0 %v210_v45  ;;  %v2056_v9 = vpack.c.bf16 %v870_v4, %v866_v2  ;;  %v903_v45 = vld [vmem:[#allocation14 + $0x168] sm:$0xff]  ;;  %v2104_v2 = vpack.c.bf16 %v904_v62, %v900_v61  ;;  %v920_v21 = vld [vmem:[#allocation14 + $0x1f0] sm:$0xff] }
 0x47e   :  { %2085 = vmatpush1.bf16.msra.mxu0 %v2084_v56  ;;  %1279 = vmatprep.mubr.f32.mxu0 %v2675_v1  ;;  %v2070_v55 = vpack.c.bf16 %v903_v45, %v899_v54  ;;  %v901_v56 = vld [vmem:[#allocation14 + $0x158] sm:$0xff]  ;;  %v911_v4 = vld [vmem:[#allocation14 + $0x1a8] sm:$0xff]  ;;  %v2112_v23 = vpack.c.bf16 %v920_v21, %v916_v58 }
 0x47f   :  { %2087 = vmatprep.subr.bf16.mxu0 %v2086_v3  ;;  %2057 = vmatpush1.bf16.msra.mxu1 %v2056_v9  ;;  %v907_v3 = vld [vmem:[#allocation14 + $0x188] sm:$0xff]  ;;  %v913_v9 = vld [vmem:[#allocation14 + $0x1b8] sm:$0xff] }
 0x480   :  { %739 = vperm.xlu0 %2259, %v716_v18   ;;  %v878_v18 = vld [vmem:[#allocation14 + $0xa0] sm:$0xff]  ;;  %2059 = vmatprep.subr.bf16.mxu1 %v2058_v14  ;;  %v2074_v46 = vpack.c.bf16 %v911_v4, %v907_v3  ;;  %v2106_v34 = vpack.c.bf16 %v913_v9, %v909_v5  ;;  %v912_v14 = vld [vmem:[#allocation14 + $0x1b0] sm:$0xff]  ;;  %v227_v57 = vld [vmem:[#allocation11 + $0x28] sm:$0xff] }
 0x481   :  { %v2060_v31 = vpack.c.bf16 %v878_v18, %v874_v16  ;;  %v2108_v15 = vpack.c.bf16 %v912_v14, %v908_v12  ;;  %v919_v16 = vld [vmem:[#allocation14 + $0x1e8] sm:$0xff] }
 0x482   :  { %2089 = vmatpush1.bf16.msra.mxu0 %v2088_v10  ;;  %v906_v10 = vld [vmem:[#allocation14 + $0x180] sm:$0xff]  ;;  %v2078_v18 = vpack.c.bf16 %v919_v16, %v915_v36 }
 0x483   :  { %2091 = vmatprep.subr.bf16.mxu0 %v2090_v17  ;;  %2061 = vmatpush1.bf16.msra.mxu1 %v2060_v31  ;;  %v917_v17 = vld [vmem:[#allocation14 + $0x1d8] sm:$0xff]  ;;  %v918_v31 = vld [vmem:[#allocation14 + $0x1e0] sm:$0xff] }
 0x484   :  { %742 = vperm.xlu0 %2259, %v717_v38   ;;  %2063 = vmatprep.subr.bf16.mxu1 %v2062_v22  ;;  %v891_v38 = vld [vmem:[#allocation14 + $0x108] sm:$0xff] }
 0x485   :  { %v2066_v13 = vpack.c.bf16 %v895_v48, %v891_v38  ;;  %v1287_v22 = vld [vmem:[#allocation17 + $0x8] sm:$0xff]  ;;  %v224_v38 = vld [vmem:[#allocation11 + $0x10] sm:$0xff] }
 0x486   :  { %2093 = vmatpush1.bf16.msra.mxu0 %v2092_v19  ;;  %v2110_v19 = vpack.c.bf16 %v921_v41, %v917_v17  ;;  %v2114_v30 = vpack.c.bf16 %v1291_v25, %v1287_v22  ;;  %v229_v25 = vld [vmem:[#allocation11 + $0x38] sm:$0xff] }
 0x487   :  { %2095 = vmatprep.subr.bf16.mxu0 %v2094_v27  ;;  %2065 = vmatpush1.bf16.msra.mxu1 %v2064_v29  ;;  %v1293_v27 = vld [vmem:[#allocation17 + $0x38] sm:$0xff] }
 0x488   :  { %745 = vperm.xlu0 %2259, %v718_v20   ;;  %2067 = vmatprep.subr.bf16.mxu1 %v2066_v13  ;;  %v905_v20 = vld [vmem:[#allocation14 + $0x178] sm:$0xff]  ;;  %v2146_v32 = vpack.c.bf16 %v1293_v27, %v1289_v26  ;;  %v222_v13 = vld [vmem:[#allocation11] sm:$0xff] }
 0x489   :  { %v2102_v59 = vpack.c.bf16 %v905_v20, %v901_v56 }
 0x48a   :  { %2097 = vmatpush1.bf16.msra.mxu0 %v2096_v37  ;;  %v223_v37 = vld [vmem:[#allocation11 + $0x8] sm:$0xff] }
 0x48b   :  { %2099 = vmatprep.subr.bf16.mxu0 %v2098_v44  ;;  %2069 = vmatpush1.bf16.msra.mxu1 %v2068_v52  ;;  %v226_v52 = vld [vmem:[#allocation11 + $0x20] sm:$0xff] }
 0x48c   :  { %748 = vperm.xlu0 %2259, %v719_v24   ;;  %2071 = vmatprep.subr.bf16.mxu1 %v2070_v55  ;;  %v910_v24 = vld [vmem:[#allocation14 + $0x1a0] sm:$0xff] }
 0x48d   :  { %v2076_v11 = vpack.c.bf16 %v910_v24, %v906_v10  ;;  %v228_v10 = vld [vmem:[#allocation11 + $0x30] sm:$0xff] }
 0x48e   :  { %2101 = vmatpush1.bf16.msra.mxu0 %v2100_v53 }
 0x48f   :  { %2103 = vmatprep.subr.bf16.mxu0 %v2102_v59  ;;  %2073 = vmatpush1.bf16.msra.mxu1 %v2072_v63 }
 0x490   :  { %751 = vperm.xlu0 %2259, %v720_v28   ;;  %2075 = vmatprep.subr.bf16.mxu1 %v2074_v46  ;;  %v2080_v28 = vpack.c.bf16 %v918_v31, %v914_v47 }
 0x492   :  { %2105 = vmatpush1.bf16.msra.mxu0 %v2104_v2 }
 0x493   :  { %2107 = vmatprep.subr.bf16.mxu0 %v2106_v34  ;;  %2077 = vmatpush1.bf16.msra.mxu1 %v2076_v11 }
 0x494   :  { %2079 = vmatprep.subr.bf16.mxu1 %v2078_v18 }
 0x496   :  { %2109 = vmatpush1.bf16.msra.mxu0 %v2108_v15 }
 0x497   :  { %2111 = vmatprep.subr.bf16.mxu0 %v2110_v19  ;;  %2081 = vmatpush1.bf16.msra.mxu1 %v2080_v28 }
 0x498   :  { %2115 = vmatprep.subr.bf16.mxu1 %v2114_v30 }
 0x49a   :  { %2113 = vmatpush1.bf16.msra.mxu0 %v2112_v23 }
 0x49b   :  { %2147 = vmatprep.subr.bf16.mxu0 %v2146_v32 }
 0x4f3   :  { %v731_v33 = vpop.permute.xlu0 %730 }
 0x4f4   :  { %v802_v44 = vmul.f32 %v731_v33, %v222_v13  ;;  %v756_v5 = vrot.slane %v731_v33, %v2993_v35 }
 0x4f6   :  { %v810_v54 = vrot.slane %v802_v44, 4 }
 0x4f7   :  { %v734_v29 = vpop.permute.xlu0 %733 }
 0x4f8   :  { %v803_v40 = vmul.f32 %v734_v29, %v223_v37  ;;  %v811_v61 = vadd.f32 %v810_v54, %v802_v44  ;;  %v760_v62 = vrot.slane %v734_v29, %v2993_v35 }
 0x4fa   :  { %v816_v50 = vrot.slane %v803_v40, 4  ;;  %v812_v12 = vrot.slane %v811_v61, 2  ;;  %v785_v14 = vsel %vm512_vm1, %v760_v62, %v756_v5 }
 0x4fb   :  { %v737_v48 = vpop.permute.xlu0 %736 }
 0x4fc   :  { %v804_v42 = vmul.f32 %v737_v48, %v224_v38  ;;  %v817_v20 = vadd.f32 %v816_v50, %v803_v40  ;;  %v764_v9 = vrot.slane %v737_v48, %v2993_v35  ;;  %v813_v26 = vadd.f32 %v812_v12, %v811_v61  ;;  %v1299_v12 = vld [vmem:[#allocation17 + $0x68] sm:$0xff] }
 0x4fe   :  { %v822_v53 = vrot.slane %v804_v42, 4  ;;  %v818_v46 = vrot.slane %v817_v20, 2  ;;  %v786_v19 = vsel %vm514_vm2, %v764_v9, %v785_v14  ;;  %v814_v50 = vrot.slane %v813_v26, 1  ;;  %v1288_v9 = vld [vmem:[#allocation17 + $0x10] sm:$0xff]  ;;  %v1297_v14 = vld [vmem:[#allocation17 + $0x58] sm:$0xff] }
 0x4ff   :  { %v740_v49 = vpop.permute.xlu0 %739 }
 0x500   :  { %v805_v51 = vmul.f32 %v740_v49, %v225_v43  ;;  %v823_v59 = vadd.f32 %v822_v53, %v804_v42  ;;  %v768_v34 = vrot.slane %v740_v49, %v2993_v35  ;;  %v819_v31 = vadd.f32 %v818_v46, %v817_v20 }
 0x502   :  { %v828_v45 = vrot.slane %v805_v51, 4  ;;  %v824_v24 = vrot.slane %v823_v59, 2  ;;  %v787_v21 = vsel %vm516_vm3, %v768_v34, %v786_v19  ;;  %v820_v48 = vrot.slane %v819_v31, 1 }
 0x503   :  { %v743_v55 = vpop.permute.xlu0 %742 }
 0x504   :  { %v806_v56 = vmul.f32 %v743_v55, %v226_v52  ;;  %v829_v63 = vadd.f32 %v828_v45, %v805_v51  ;;  %v772_v36 = vrot.slane %v743_v55, %v2993_v35  ;;  %v825_v58 = vadd.f32 %v824_v24, %v823_v59  ;;  %v1295_v24 = vld [vmem:[#allocation17 + $0x48] sm:$0xff] }
 0x505   :  { %v821_v45 = vadd.f32 %v820_v48, %v819_v31  ;;  %v1298_v31 = vld [vmem:[#allocation17 + $0x60] sm:$0xff] }
 0x506   :  { %v834_v60 = vrot.slane %v806_v56, 4  ;;  %v830_v15 = vrot.slane %v829_v63, 2  ;;  %v788_v30 = vsel %vm518_vm4, %v772_v36, %v787_v21  ;;  %v826_v43 = vrot.slane %v825_v58, 1  ;;  %v1296_v21 = vld [vmem:[#allocation17 + $0x50] sm:$0xff] }
 0x507   :  { %v746_v2 = vpop.permute.xlu0 %745 }
 0x508   :  { %v835_v3 = vadd.f32 %v834_v60, %v806_v56  ;;  %v807_v4 = vmul.f32 %v746_v2, %v227_v57  ;;  %v776_v18 = vrot.slane %v746_v2, %v2993_v35  ;;  %v831_v27 = vadd.f32 %v830_v15, %v829_v63  ;;  %v1301_v15 = vld [vmem:[#allocation17 + $0x78] sm:$0xff] }
 0x509   :  { %v815_v57 = vadd.f32 %v814_v50, %v813_v26  ;;  %v1307_v26 = vld [vmem:[#allocation17 + $0xa8] sm:$0xff] }
 0x50a   :  { %v840_v11 = vrot.slane %v807_v4, 4  ;;  %v836_v17 = vrot.slane %v835_v3, 2  ;;  %v789_v29 = vsel %vm520_vm5, %v776_v18, %v788_v30  ;;  %v832_v51 = vrot.slane %v831_v27, 1  ;;  %v1309_v30 = vld [vmem:[#allocation17 + $0xb8] sm:$0xff] }
 0x50b   :  { %v749_v16 = vpop.permute.xlu0 %748  ;;  %v1136_v62 = vsel %vm512_vm1, %v821_v45, %v815_v57  ;;  %v1321_v57 = vld [vmem:[#allocation17 + $0x118] sm:$0xff] }
 0x50c   :  { %v841_v41 = vadd.f32 %v840_v11, %v807_v4  ;;  %v808_v47 = vmul.f32 %v749_v16, %v228_v10  ;;  %v780_v28 = vrot.slane %v749_v16, %v2993_v35  ;;  %v837_v33 = vadd.f32 %v836_v17, %v835_v3  ;;  %v1286_v3 = vld [vmem:[#allocation17] sm:$0xff]  ;;  %v1292_v10 = vld [vmem:[#allocation17 + $0x30] sm:$0xff] }
 0x50d   :  { %v833_v59 = vadd.f32 %v832_v51, %v831_v27  ;;  %v1290_v4 = vld [vmem:[#allocation17 + $0x20] sm:$0xff]  ;;  %v1305_v27 = vld [vmem:[#allocation17 + $0x98] sm:$0xff] }
 0x50e   :  { %v842_v22 = vrot.slane %v841_v41, 2  ;;  %v846_v23 = vrot.slane %v808_v47, 4  ;;  %v790_v42 = vsel %vm522_vm6, %v780_v28, %v789_v29  ;;  %v838_v53 = vrot.slane %v837_v33, 1  ;;  %v1302_v29 = vld [vmem:[#allocation17 + $0x80] sm:$0xff] }
 0x50f   :  { %v752_v32 = vpop.permute.xlu0 %751  ;;  %v2116_v18 = vpack.c.bf16 %v1290_v4, %v1286_v3  ;;  %v2118_v28 = vpack.c.bf16 %v1299_v12, %v1295_v24  ;;  %v2154_v48 = vpack.c.bf16 %v1309_v30, %v1305_v27  ;;  %v1320_v4 = vld [vmem:[#allocation17 + $0x110] sm:$0xff]  ;;  %v1333_v24 = vld [vmem:[#allocation17 + $0x178] sm:$0xff]  ;;  %v1326_v12 = vld [vmem:[#allocation17 + $0x140] sm:$0xff] }
 0x510   :  { %v847_v37 = vadd.f32 %v846_v23, %v808_v47  ;;  %v784_v38 = vrot.slane %v752_v32, %v2993_v35  ;;  %v843_v13 = vadd.f32 %v842_v22, %v841_v41  ;;  %v809_v40 = vmul.f32 %v752_v32, %v229_v25  ;;  %v1294_v47 = vld [vmem:[#allocation17 + $0x40] sm:$0xff]  ;;  %v1300_v22 = vld [vmem:[#allocation17 + $0x70] sm:$0xff]  ;;  %v1303_v23 = vld [vmem:[#allocation17 + $0x88] sm:$0xff] }
 0x511   :  { %v827_v35 = vadd.f32 %v826_v43, %v825_v58  ;;  %v839_v61 = vadd.f32 %v838_v53, %v837_v33  ;;  %v2148_v41 = vpack.c.bf16 %v1292_v10, %v1288_v9  ;;  %v2150_v58 = vpack.c.bf16 %v1301_v15, %v1297_v14  ;;  %v1315_v43 = vld [vmem:[#allocation17 + $0xe8] sm:$0xff]  ;;  %v1314_v53 = vld [vmem:[#allocation17 + $0xe0] sm:$0xff]  ;;  %v1329_v10 = vld [vmem:[#allocation17 + $0x158] sm:$0xff] }
 0x512   :  { %v848_v44 = vrot.slane %v847_v37, 2  ;;  %v791_v49 = vsel %vm524_vm7, %v784_v38, %v790_v42  ;;  %v852_v52 = vrot.slane %v809_v40, 4  ;;  %v844_v55 = vrot.slane %v843_v13, 1  ;;  %v1311_v42 = vld [vmem:[#allocation17 + $0xc8] sm:$0xff]  ;;  %v1330_v14 = vld [vmem:[#allocation17 + $0x160] sm:$0xff] }
 0x513   :  { %793 = vst.msk [vmem:[#allocation25] sm:$0xff] %vm527_vm8, %v791_v49  ;;  %v1137_v5 = vsel %vm514_vm2, %v827_v35, %v1136_v62  ;;  %v2120_v32 = vpack.c.bf16 %v1298_v31, %v1294_v47  ;;  %v2152_v33 = vpack.c.bf16 %v1300_v22, %v1296_v21  ;;  %v2122_v38 = vpack.c.bf16 %v1307_v26, %v1303_v23  ;;  %v1317_v49 = vld [vmem:[#allocation17 + $0xf8] sm:$0xff]  ;;  %v1319_v35 = vld [vmem:[#allocation17 + $0x108] sm:$0xff]  ;;  %v1318_v62 = vld [vmem:[#allocation17 + $0x100] sm:$0xff] }
 0x514   :  { %v849_v54 = vadd.f32 %v848_v44, %v847_v37  ;;  %v853_v56 = vadd.f32 %v852_v52, %v809_v40  ;;  %v845_v63 = vadd.f32 %v844_v55, %v843_v13  ;;  %v1138_v34 = vsel %vm516_vm3, %v833_v59, %v1137_v5  ;;  %v1306_v37 = vld [vmem:[#allocation17 + $0xa0] sm:$0xff]  ;;  %v1304_v13 = vld [vmem:[#allocation17 + $0x90] sm:$0xff]  ;;  %v1313_v44 = vld [vmem:[#allocation17 + $0xd8] sm:$0xff] }
 0x515   :  { %v1139_v36 = vsel %vm518_vm4, %v839_v61, %v1138_v34  ;;  %v1308_v40 = vld [vmem:[#allocation17 + $0xb0] sm:$0xff]  ;;  %v2124_v50 = vpack.c.bf16 %v1306_v37, %v1302_v29  ;;  %v1310_v52 = vld [vmem:[#allocation17 + $0xc0] sm:$0xff]  ;;  %v2158_v45 = vpack.c.bf16 %v1317_v49, %v1313_v44  ;;  %v1325_v59 = vld [vmem:[#allocation17 + $0x138] sm:$0xff] }
 0x516   :  { %v850_v20 = vrot.slane %v849_v54, 1  ;;  %v854_v60 = vrot.slane %v853_v56, 2  ;;  %v1140_v17 = vsel %vm520_vm5, %v845_v63, %v1139_v36  ;;  %v2156_v51 = vpack.c.bf16 %v1308_v40, %v1304_v13  ;;  %v1312_v55 = vld [vmem:[#allocation17 + $0xd0] sm:$0xff]  ;;  %v1322_v63 = vld [vmem:[#allocation17 + $0x120] sm:$0xff]  ;;  %v1331_v9 = vld [vmem:[#allocation17 + $0x168] sm:$0xff] }
 0x517   :  { %v2162_v3 = vpack.c.bf16 %v1325_v59, %v1321_v57  ;;  %v1324_v5 = vld [vmem:[#allocation17 + $0x130] sm:$0xff]  ;;  %v2132_v34 = vpack.c.bf16 %v1322_v63, %v1318_v62  ;;  %v2166_v36 = vpack.c.bf16 %v1333_v24, %v1329_v10  ;;  %v1337_v47 = vld [vmem:[#allocation17 + $0x198] sm:$0xff]  ;;  %v1338_v21 = vld [vmem:[#allocation17 + $0x1a0] sm:$0xff] }
 0x518   :  { %v855_v2 = vadd.f32 %v854_v60, %v853_v56  ;;  %v851_v46 = vadd.f32 %v850_v20, %v849_v54  ;;  %v2126_v54 = vpack.c.bf16 %v1315_v43, %v1311_v42  ;;  %v1316_v56 = vld [vmem:[#allocation17 + $0xf0] sm:$0xff]  ;;  %v1323_v20 = vld [vmem:[#allocation17 + $0x128] sm:$0xff]  ;;  %v2128_v60 = vpack.c.bf16 %v1314_v53, %v1310_v52  ;;  %v1341_v31 = vld [vmem:[#allocation17 + $0x1b8] sm:$0xff] }
 0x519   :  { %v2160_v61 = vpack.c.bf16 %v1316_v56, %v1312_v55  ;;  %v2170_v23 = vpack.c.bf16 %v1341_v31, %v1337_v47  ;;  %v1340_v26 = vld [vmem:[#allocation17 + $0x1b0] sm:$0xff]  ;;  %v1343_v27 = vld [vmem:[#allocation17 + $0x1c8] sm:$0xff]  ;;  %v1346_v40 = vld [vmem:[#allocation17 + $0x1e0] sm:$0xff] }
 0x51a   :  { %v856_v11 = vrot.slane %v855_v2, 1  ;;  %v1141_v19 = vsel %vm522_vm6, %v851_v46, %v1140_v17  ;;  %v1327_v46 = vld [vmem:[#allocation17 + $0x148] sm:$0xff]  ;;  %v1332_v17 = vld [vmem:[#allocation17 + $0x170] sm:$0xff]  ;;  %v1552_v56 = vld [vmem:[#allocation18 + $0x20] sm:$0xff] }
 0x51b   :  { %v2134_v15 = vpack.c.bf16 %v1331_v9, %v1327_v46  ;;  %v1347_v30 = vld [vmem:[#allocation17 + $0x1e8] sm:$0xff]  ;;  %v1344_v42 = vld [vmem:[#allocation17 + $0x1d0] sm:$0xff]  ;;  %v1563_v10 = vld [vmem:[#allocation18 + $0x78] sm:$0xff] }
 0x51c   :  { %v857_v16 = vadd.f32 %v856_v11, %v855_v2  ;;  %v2130_v2 = vpack.c.bf16 %v1323_v20, %v1319_v35  ;;  %v2164_v11 = vpack.c.bf16 %v1324_v5, %v1320_v4  ;;  %v1348_v43 = vld [vmem:[#allocation17 + $0x1f0] sm:$0xff]  ;;  %v1549_v52 = vld [vmem:[#allocation18 + $0x8] sm:$0xff]  ;;  %v1560_v4 = vld [vmem:[#allocation18 + $0x60] sm:$0xff] }
 0x51d   :  { %v2176_v49 = vpack.c.bf16 %v1348_v43, %v1344_v42  ;;  %v1553_v35 = vld [vmem:[#allocation18 + $0x28] sm:$0xff]  ;;  %v1554_v57 = vld [vmem:[#allocation18 + $0x30] sm:$0xff]  ;;  %v1651_v47 = vld [vmem:[#allocation20 + $0x38] sm:$0xff] }
 0x51e   :  { %v1142_v25 = vsel %vm524_vm7, %v857_v16, %v1141_v19  ;;  %v1328_v16 = vld [vmem:[#allocation17 + $0x150] sm:$0xff]  ;;  %v2136_v19 = vpack.c.bf16 %v1330_v14, %v1326_v12  ;;  %v2185_v20 = vpack.c.bf16 %v1553_v35, %v1552_v56  ;;  %v1561_v5 = vld [vmem:[#allocation18 + $0x68] sm:$0xff] }
 0x51f   :  { %1209 = vmatmul.mubr.f32.vlgmr.msra.gmra.mrb[0].mxu1 %v1142_v25  ;;  %1280 = vmatmul.mubr.f32.vlgmr.msra.gmra.mrb[2].mxu0 %v1142_v25  ;;  %v1336_v25 = vld [vmem:[#allocation17 + $0x190] sm:$0xff]  ;;  %v2197_v46 = vpack.c.bf16 %v1561_v5, %v1560_v4 }
 0x520   :  { %2117 = vmatpush1.bf16.msra.mxu1 %v2116_v18  ;;  %2149 = vmatpush1.bf16.msra.mxu0 %v2148_v41  ;;  %v1335_v18 = vld [vmem:[#allocation17 + $0x188] sm:$0xff]  ;;  %v2172_v37 = vpack.c.bf16 %v1340_v26, %v1336_v25  ;;  %v1558_v62 = vld [vmem:[#allocation18 + $0x50] sm:$0xff]  ;;  %v1656_v25 = vld [vmem:[#allocation20 + $0x60] sm:$0xff] }
 0x521   :  { %2119 = vmatprep.subr.bf16.mxu1 %v2118_v28  ;;  %2151 = vmatprep.subr.bf16.mxu0 %v2150_v58  ;;  %v1339_v41 = vld [vmem:[#allocation17 + $0x1a8] sm:$0xff]  ;;  %v2168_v28 = vpack.c.bf16 %v1332_v17, %v1328_v16  ;;  %v1334_v58 = vld [vmem:[#allocation17 + $0x180] sm:$0xff]  ;;  %v1562_v9 = vld [vmem:[#allocation18 + $0x70] sm:$0xff] }
 0x522   :  { %1414 = vmatprep.mubr.f32.mxu1 %v2675_v1  ;;  %1485 = vmatprep.mubr.f32.mxu0 %v2675_v1  ;;  %v2138_v22 = vpack.c.bf16 %v1339_v41, %v1335_v18  ;;  %v2140_v29 = vpack.c.bf16 %v1338_v21, %v1334_v58  ;;  %v2200_v24 = vpack.c.bf16 %v1563_v10, %v1562_v9  ;;  %v1646_v12 = vld [vmem:[#allocation20 + $0x10] sm:$0xff]  ;;  %v1648_v16 = vld [vmem:[#allocation20 + $0x20] sm:$0xff]  ;;  %v1649_v17 = vld [vmem:[#allocation20 + $0x28] sm:$0xff] }
 0x523   :  { %v2209_v18 = vpack.c.bf16 %v1649_v17, %v1648_v16  ;;  %v1650_v41 = vld [vmem:[#allocation20 + $0x30] sm:$0xff]  ;;  %v1657_v26 = vld [vmem:[#allocation20 + $0x68] sm:$0xff] }
 0x524   :  { %2121 = vmatpush1.bf16.msra.mxu1 %v2120_v32  ;;  %2153 = vmatpush1.bf16.msra.mxu0 %v2152_v33  ;;  %v1345_v32 = vld [vmem:[#allocation17 + $0x1d8] sm:$0xff]  ;;  %v2212_v31 = vpack.c.bf16 %v1651_v47, %v1650_v41  ;;  %v1654_v21 = vld [vmem:[#allocation20 + $0x50] sm:$0xff] }
 0x525   :  { %2123 = vmatprep.subr.bf16.mxu1 %v2122_v38  ;;  %2155 = vmatprep.subr.bf16.mxu0 %v2154_v48  ;;  %v1349_v33 = vld [vmem:[#allocation17 + $0x1f8] sm:$0xff]  ;;  %v1342_v38 = vld [vmem:[#allocation17 + $0x1c0] sm:$0xff]  ;;  %v2142_v48 = vpack.c.bf16 %v1347_v30, %v1343_v27  ;;  %v2221_v27 = vpack.c.bf16 %v1657_v26, %v1656_v25  ;;  %v1496_v30 = vld [vmem:[%s3230_s13] sm:$0xf] }
 0x526   :  { %v2174_v13 = vpack.c.bf16 %v1349_v33, %v1345_v32  ;;  %v2144_v44 = vpack.c.bf16 %v1346_v40, %v1342_v38  ;;  %v1501_v32 = vrot.slane %v1496_v30, %v2975_v39  ;;  %v1505_v33 = vrot.slane %v1496_v30, %v3012_v6 }
 0x528   :  { %2125 = vmatpush1.bf16.msra.mxu1 %v2124_v50  ;;  %2157 = vmatpush1.bf16.msra.mxu0 %v2156_v51  ;;  %v211_v50 = vld [vmem:[#allocation6] sm:$0xff]  ;;  %v1548_v51 = vld [vmem:[#allocation18] sm:$0xff] }
 0x529   :  { %2127 = vmatprep.subr.bf16.mxu1 %v2126_v54  ;;  %2159 = vmatprep.subr.bf16.mxu0 %v2158_v45  ;;  %v2179_v53 = vpack.c.bf16 %v1549_v52, %v1548_v51  ;;  %v1550_v54 = vld [vmem:[#allocation18 + $0x10] sm:$0xff]  ;;  %v1551_v45 = vld [vmem:[#allocation18 + $0x18] sm:$0xff] }
 0x52a   :  { %v2182_v55 = vpack.c.bf16 %v1551_v45, %v1550_v54 }
 0x52c   :  { %2129 = vmatpush1.bf16.msra.mxu1 %v2128_v60  ;;  %2161 = vmatpush1.bf16.msra.mxu0 %v2160_v61  ;;  %v1556_v60 = vld [vmem:[#allocation18 + $0x40] sm:$0xff]  ;;  %v1557_v61 = vld [vmem:[#allocation18 + $0x48] sm:$0xff] }
 0x52d   :  { %2131 = vmatprep.subr.bf16.mxu1 %v2130_v2  ;;  %2163 = vmatprep.subr.bf16.mxu0 %v2162_v3  ;;  %v2191_v63 = vpack.c.bf16 %v1557_v61, %v1556_v60  ;;  %v1559_v2 = vld [vmem:[#allocation18 + $0x58] sm:$0xff]  ;;  %v1658_v61 = vld [vmem:[#allocation20 + $0x70] sm:$0xff] }
 0x52e   :  { %v2194_v3 = vpack.c.bf16 %v1559_v2, %v1558_v62  ;;  %v1659_v62 = vld [vmem:[#allocation20 + $0x78] sm:$0xff]  ;;  %v1804_v2 = vld [vmem:[%s3232_s15] ss:$0 sm:$0xff] }
 0x530   :  { %2133 = vmatpush1.bf16.msra.mxu1 %v2132_v34  ;;  %2165 = vmatpush1.bf16.msra.mxu0 %v2164_v11  ;;  %v1644_v34 = vld [vmem:[#allocation20] sm:$0xff]  ;;  %v1645_v11 = vld [vmem:[#allocation20 + $0x8] sm:$0xff] }
 0x531   :  { %2135 = vmatprep.subr.bf16.mxu1 %v2134_v15  ;;  %2167 = vmatprep.subr.bf16.mxu0 %v2166_v36  ;;  %v2203_v14 = vpack.c.bf16 %v1645_v11, %v1644_v34  ;;  %v1647_v15 = vld [vmem:[#allocation20 + $0x18] sm:$0xff] }
 0x532   :  { %v2206_v36 = vpack.c.bf16 %v1647_v15, %v1646_v12 }
 0x534   :  { %2137 = vmatpush1.bf16.msra.mxu1 %v2136_v19  ;;  %2169 = vmatpush1.bf16.msra.mxu0 %v2168_v28  ;;  %v1652_v19 = vld [vmem:[#allocation20 + $0x40] sm:$0xff]  ;;  %v1653_v28 = vld [vmem:[#allocation20 + $0x48] sm:$0xff] }
 0x535   :  { %2139 = vmatprep.subr.bf16.mxu1 %v2138_v22  ;;  %2171 = vmatprep.subr.bf16.mxu0 %v2170_v23  ;;  %v2215_v58 = vpack.c.bf16 %v1653_v28, %v1652_v19  ;;  %v1655_v22 = vld [vmem:[#allocation20 + $0x58] sm:$0xff] }
 0x536   :  { %v2218_v23 = vpack.c.bf16 %v1655_v22, %v1654_v21 }
 0x538   :  { %2141 = vmatpush1.bf16.msra.mxu1 %v2140_v29  ;;  %2173 = vmatpush1.bf16.msra.mxu0 %v2172_v37 }
 0x539   :  { %2143 = vmatprep.subr.bf16.mxu1 %v2142_v48  ;;  %2175 = vmatprep.subr.bf16.mxu0 %v2174_v13 }
 0x53c   :  { %2145 = vmatpush1.bf16.msra.mxu1 %v2144_v44  ;;  %2177 = vmatpush1.bf16.msra.mxu0 %v2176_v49  ;;  %v1513_v44 = vrot.slane %v1496_v30, %v3018_v8  ;;  %v1509_v49 = vrot.slane %v1496_v30, %v3015_v7  ;;  %v212_v8 = vld [vmem:[%s3260_s6] sm:$0xff] }
 0x53d   :  { %2178 = vmatprep.subr.bf16.mxu1 %v2673_v0  ;;  %2202 = vmatprep.subr.bf16.mxu0 %v2673_v0 }
 0x53f   :  { %1415 = vmatmul.mubr.f32.vlgmr.msra.gmra.mrb[0].mxu1 %v211_v50  ;;  %1486 = vmatmul.mubr.f32.vlgmr.msra.gmra.mrb[2].mxu0 %v211_v50 }
 0x540   :  { %1924 = vmatprep.mubr.msk.f32.mxu1 %vm2674_vm0, %v2675_v1  ;;  %1959 = vmatprep.mubr.msk.f32.mxu0 %vm2674_vm0, %v2675_v1  ;;  %v1555_v1 = vld [vmem:[#allocation18 + $0x38] sm:$0xff] }
 0x541   :  { %2180 = vmatpush3.bf16.msra.mxu1 %v2179_v53  ;;  %v2188_v59 = vpack.c.bf16 %v1555_v1, %v1554_v57  ;;  %2204 = vmatpush3.bf16.msra.mxu0 %v2203_v14 }
 0x542   :  { %2181 = vmatprep.subr.bf16.mxu1 %v2673_v0  ;;  %2205 = vmatprep.subr.bf16.mxu0 %v2673_v0 }
 0x545   :  { %2183 = vmatpush3.bf16.msra.mxu1 %v2182_v55  ;;  %2207 = vmatpush3.bf16.msra.mxu0 %v2206_v36 }
 0x546   :  { %2184 = vmatprep.subr.bf16.mxu1 %v2673_v0  ;;  %2208 = vmatprep.subr.bf16.mxu0 %v2673_v0 }
 0x549   :  { %2186 = vmatpush3.bf16.msra.mxu1 %v2185_v20  ;;  %2210 = vmatpush3.bf16.msra.mxu0 %v2209_v18 }
 0x54a   :  { %2187 = vmatprep.subr.bf16.mxu1 %v2673_v0  ;;  %2211 = vmatprep.subr.bf16.mxu0 %v2673_v0 }
 0x54d   :  { %2189 = vmatpush3.bf16.msra.mxu1 %v2188_v59  ;;  %2213 = vmatpush3.bf16.msra.mxu0 %v2212_v31 }
 0x54e   :  { %2190 = vmatprep.subr.bf16.mxu1 %v2673_v0  ;;  %2214 = vmatprep.subr.bf16.mxu0 %v2673_v0 }
 0x551   :  { %2192 = vmatpush3.bf16.msra.mxu1 %v2191_v63  ;;  %2216 = vmatpush3.bf16.msra.mxu0 %v2215_v58  ;;  %v2224_v63 = vpack.c.bf16 %v1659_v62, %v1658_v61 }
 0x552   :  { %2193 = vmatprep.subr.bf16.mxu1 %v2673_v0  ;;  %2217 = vmatprep.subr.bf16.mxu0 %v2673_v0 }
 0x555   :  { %2195 = vmatpush3.bf16.msra.mxu1 %v2194_v3  ;;  %2219 = vmatpush3.bf16.msra.mxu0 %v2218_v23 }
 0x556   :  { %2196 = vmatprep.subr.bf16.mxu1 %v2673_v0  ;;  %2220 = vmatprep.subr.bf16.mxu0 %v2673_v0 }
 0x559   :  { %2198 = vmatpush3.bf16.msra.mxu1 %v2197_v46  ;;  %2222 = vmatpush3.bf16.msra.mxu0 %v2221_v27 }
 0x55a   :  { %2199 = vmatprep.subr.bf16.mxu1 %v2673_v0  ;;  %2223 = vmatprep.subr.bf16.mxu0 %v2673_v0 }
 0x55d   :  { %2201 = vmatpush3.bf16.msra.mxu1 %v2200_v24  ;;  %2225 = vmatpush3.bf16.msra.mxu0 %v2224_v63 }
 0x612   :  { %v1416_v29 = vpop.f32.mrb[0].mxu1  ;;  %v1487_v37 = vpop.f32.mrb[2].mxu0 }
 0x613   :  { %v1518_v38 = vadd.f32 %v1501_v32, %v1416_v29  ;;  %v1418_v48 = vpop.f32.mrb[1].mxu1  ;;  %v1489_v13 = vpop.f32.mrb[3].mxu0  ;;  %v1520_v51 = vadd.f32 %v1509_v49, %v1487_v37 }
 0x614   :  { %v1519_v40 = vadd.f32 %v1505_v33, %v1418_v48  ;;  %v1521_v0 = vadd.f32 %v1513_v44, %v1489_v13 }
 0x615   :  { %v1801_v42 = vmul.f32 -1.442695, %v1518_v38 }
 0x616   :  { %v1802_v43 = vmul.f32 -1.442695, %v1519_v40  ;;  %v1803_v50 = vmul.f32 -1.442695, %v1521_v0 }
 0x617   :  { %2294 = vpow2.f32 %v1801_v42 }
 0x618   :  { %2296 = vpow2.f32 %v1802_v43 }
 0x619   :  { %2298 = vpow2.f32 %v1803_v50 }
 0x61a   :  { %2300 = vtanh.f32 %v1520_v51 }
 0x621   :  { %v2295_v39 = vpop.eup %2294 }
 0x622   :  { %v2297_v52 = vpop.eup %2296  ;;  %v1525_v6 = vadd.f32 1.0, %v2295_v39 }
 0x623   :  { %v1531_v53 = vadd.f32 1.0, %v2297_v52  ;;  %v2299_v54 = vpop.eup %2298 }
 0x624   :  { %2302 = vrcp.f32 %v1525_v6  ;;  %v2301_v45 = vpop.eup %2300  ;;  %v1538_v7 = vadd.f32 1.0, %v2299_v54 }
 0x625   :  { %2304 = vrcp.f32 %v1531_v53 }
 0x626   :  { %2306 = vrcp.f32 %v1538_v7 }
 0x62e   :  { %v2303_v55 = vpop.eup %2302 }
 0x62f   :  { %v2305_v56 = vpop.eup %2304  ;;  %v1542_v35 = vmul.f32 %v2303_v55, %v2301_v45 }
 0x630   :  { %v1541_v20 = vmul.f32 %v2305_v56, %v212_v8  ;;  %v2307_v1 = vpop.eup %2306 }
 0x632   :  { %v1543_v57 = vadd.f32 %v1542_v35, %v1541_v20 }
 0x634   :  { %1547 = vst [vmem:[#allocation24] sm:$0xff] %v1543_v57  ;;  %2308 = vtanh.f32 %v1543_v57 }
 0x63e   :  { %v2309_v59 = vpop.eup %2308 }
 0x63f   :  { %v1545_v60 = vmul.f32 %v2309_v59, %v2307_v1 }
 0x641   :  { %1925 = vmatmul.mubr.f32.vlgmr.msra.gmra.mrb[2].mxu1 %v1545_v60  ;;  %1546 = vst [vmem:[#allocation22] sm:$0xff] %v1545_v60 }
 0x714   :  { %v1637_v3 = vpop.f32.mrb[2].mxu1 }
 0x715   :  { %v1638_v4 = vadd.f32 %v1804_v2, %v1637_v3  ;;  %v1926_v5 = vpop.f32.mrb[3].mxu1 }
 0x717   :  { %vm1641_vm9 = vcmp.ge.f32.partialorder %v1638_v4, 0.0  ;;  %v1642_v46 = vmul.f32 0.01, %v1638_v4 }
 0x719   :  { %v1643_v9 = vsel %vm1641_vm9, %v1638_v4, %v1642_v46 }
 0x71a   :  { %1960 = vmatmul.mubr.f32.vlgmr.msra.gmra.mrb[4].mxu0 %v1643_v9 }
 0x71b   :  { %2563 = shalt.err (!%p2560_p8)
}
 0x71c   :  { %s2564_s15 = scalar_lea.hbm %s3236_s19, 128 }
 0x71d   :  { %p2565_p9 = scmp.ne.s32.totalorder %s3236_s19, %s2564_s15  ;;  %p2568_p10 = scmp.lt.u32.totalorder %s2564_s15, %s3236_s19 }
 0x71f   :  { %p2570_p11 = pnand %p2568_p10, %p2565_p9 }
 0x721   :  { %2573 = shalt.err (!%p2570_p11)
}
 0x722   :  { %1757 = dma.vmem_to_hbm [thread:$0]  %s1755_s11, 128, %s3236_s19, [#allocation23]  }
 0x723   :  { %s2679_s12 = smov [#allocation24]   ;;  %s2680_s16 = smov [#allocation25]  }
 0x724   :  { %s1764_s27 = sshll.u32 %s2679_s12, 4  ;;  %s1774_s25 = sshll.u32 %s2680_s16, 4  ;;  %s1765_s27 = int_to_ptr.vmem [resolvable:$true] %s1764_s27  ;;  %s1775_s25 = int_to_ptr.vmem [resolvable:$true] %s1774_s25 }
 0x725   :  { %s2574_s7 = scalar_lea.vmem %s1765_s27, 128  ;;  %p2579_p13 = scmp.lt.s32.totalorder %s1765_s27, %s1765_s27 }
 0x726   :  { %p2575_p12 = scmp.ne.s32.totalorder %s1765_s27, %s2574_s7  ;;  %p2580_p0 = scmp.lt.s32.totalorder %s2574_s7, %s2574_s7 }
 0x728   :  { %p2581_p1 = por %p2580_p0, %p2579_p13 }
 0x72a   :  { %p2582_p2 = pnand %p2581_p1, %p2575_p12 }
 0x72c   :  { %2585 = shalt.err (!%p2582_p2)
}
 0x72d   :  { %s2586_s14 = scalar_lea.hbm %s3237_s20, 128 }
 0x72e   :  { %p2587_p3 = scmp.ne.s32.totalorder %s3237_s20, %s2586_s14  ;;  %p2590_p4 = scmp.lt.u32.totalorder %s2586_s14, %s3237_s20 }
 0x730   :  { %p2592_p5 = pnand %p2590_p4, %p2587_p3 }
 0x732   :  { %2595 = shalt.err (!%p2592_p5)
}
 0x733   :  { %1767 = dma.vmem_to_hbm [thread:$0]  %s1765_s27, 128, %s3237_s20, [#allocation23]  }
 0x734   :  { %s2596_s2 = scalar_lea.vmem %s1775_s25, 128  ;;  %p2601_p7 = scmp.lt.s32.totalorder %s1775_s25, %s1775_s25 }
 0x735   :  { %p2597_p6 = scmp.ne.s32.totalorder %s1775_s25, %s2596_s2  ;;  %p2602_p8 = scmp.lt.s32.totalorder %s2596_s2, %s2596_s2 }
 0x737   :  { %p2603_p9 = por %p2602_p8, %p2601_p7 }
 0x739   :  { %p2604_p10 = pnand %p2603_p9, %p2597_p6 }
 0x73b   :  { %2607 = shalt.err (!%p2604_p10)
}
 0x73c   :  { %s2608_s11 = scalar_lea.hbm %s3238_s21, 128 }
 0x73d   :  { %p2609_p11 = scmp.ne.s32.totalorder %s3238_s21, %s2608_s11  ;;  %p2612_p12 = scmp.lt.u32.totalorder %s2608_s11, %s3238_s21 }
 0x73f   :  { %p2614_p13 = pnand %p2612_p12, %p2609_p11 }
 0x741   :  { %2617 = shalt.err (!%p2614_p13)
}
 0x742   :  { %1777 = dma.vmem_to_hbm [thread:$0]  %s1775_s25, 128, %s3238_s21, [#allocation26]   ;;  %v1805_v10 = vld [vmem:[%s3234_s17] ss:$0 sm:$0xff] }
 0x743   :  { %s2681_s22 = smov [#allocation21]  }
 0x744   :  { %s1744_s26 = sshll.u32 %s2681_s22, 4  ;;  %s1745_s26 = int_to_ptr.vmem [resolvable:$true] %s1744_s26 }
 0x745   :  { %s2618_s1 = scalar_lea.vmem %s1745_s26, 128  ;;  %p2623_p1 = scmp.lt.s32.totalorder %s1745_s26, %s1745_s26 }
 0x746   :  { %p2619_p0 = scmp.ne.s32.totalorder %s1745_s26, %s2618_s1  ;;  %p2624_p2 = scmp.lt.s32.totalorder %s2618_s1, %s2618_s1 }
 0x748   :  { %p2625_p3 = por %p2624_p2, %p2623_p1 }
 0x74a   :  { %p2626_p4 = pnand %p2625_p3, %p2619_p0 }
 0x7ed   :  { %v1733_v24 = vpop.f32.mrb[4].mxu0 }
 0x7ee   :  { %v1734_v34 = vadd.f32 %v1805_v10, %v1733_v24  ;;  %v1961_v11 = vpop.f32.mrb[5].mxu0 }
 0x7f0   :  { %1737 = vst [vmem:[#allocation21] sm:$0xff] %v1734_v34 }
 0x7f1   :  { %2629 = shalt.err (!%p2626_p4)
}
 0x7f2   :  { %s3261_s27 = sld [smem:[#allocation42_spill]] }
 0x7f8   :  { %s2630_s16 = scalar_lea.hbm %s3261_s27, 128 }
 0x7f9   :  { %p2631_p5 = scmp.ne.s32.totalorder %s3261_s27, %s2630_s16  ;;  %p2634_p6 = scmp.lt.u32.totalorder %s2630_s16, %s3261_s27 }
 0x7fb   :  { %p2636_p7 = pnand %p2634_p6, %p2631_p5 }
 0x7fd   :  { %2639 = shalt.err (!%p2636_p7)
}
 0x7fe   :  { %1747 = dma.vmem_to_hbm [thread:$0]  %s1745_s26, 128, %s3261_s27, [#allocation5]  }
 0x7ff   :  { %2652 = dma.done.wait [#allocation5], 128  }
 0x800   :  { %2653 = vsyncadd [#allocation5], 4294967168 }
 0x801   :  { %2654 = dma.done.wait [#allocation23], 256  }
 0x802   :  { %2655 = vsyncadd [#allocation23], 4294967040 }
 0x803   :  { %2656 = dma.done.wait [#allocation26], 128  }
 0x804   :  { %2657 = vsyncadd [#allocation26], 4294967168 }
 0x805   :  { %1790 = vsyncpa [#allocation4], 1 }
 0x806   :  { %1791 = vsyncpa [#allocation7], 1 }
 0x807   :  { %1792 = vsyncpa [#allocation10], 1 }
 0x808   :  { %1793 = vsyncpa [#allocation13], 1 }
 0x809   :  { %1794 = vsyncpa [#allocation16], 1 }
 0x80a   :  { %1795 = vsyncpa [#allocation19], 1 }
 0x80b   :  { %1796 = vsyncpa [#allocation5], 1 }
 0x80c   :  { %1797 = vsyncpa [#allocation23], 1 }
 0x80d   :  { %1798 = vsyncpa [#allocation26], 1 }

</bundles_post_ra>
